<compile_context>
chip_gen: v7x
topology: tpu7x:2x2x1
jax: 0.10.0
libtpu: 0.0.40
codegen_flags: <defaults>
</compile_context>

<pallas_src>
import math

import jax
import jax.numpy as jnp
from jax.experimental import pallas as pl
from jax.experimental.pallas import tpu as pltpu


# --------------------------------------------------------------------------- #
# Kernel
# --------------------------------------------------------------------------- #
def _mmtm_kernel(tab_ref, img_ref,
                 wsq_tab_ref, wsq_img_ref, bsq_ref,
                 wtab_ref, btab_ref, wimg_ref, bimg_ref,
                 tab_gated_ref, img_gated_ref, img_gate_ref):
    """One batch tile: split squeeze matmul -> relu -> two sigmoid gates -> gate."""
    tab = tab_ref[...]   # native dtype MXU operands, no f32 upcast
    img = img_ref[...]

    # fc_squeeze + ReLU: the concat is folded into a split-K matmul that
    # accumulates both modalities into the same f32 accumulator.
    excitation = jnp.maximum(
        jnp.dot(tab, wsq_tab_ref[...], preferred_element_type=jnp.float32)
        + jnp.dot(img, wsq_img_ref[...], preferred_element_type=jnp.float32)
        + bsq_ref[...],
        0.0,
    )
    exc = excitation.astype(wtab_ref.dtype)

    # fc_tab / fc_img + sigmoid gates (f32 accumulation, f32 epilogue).
    tab_g = jax.nn.sigmoid(
        jnp.dot(exc, wtab_ref[...], preferred_element_type=jnp.float32)
        + btab_ref[...])
    img_g = jax.nn.sigmoid(
        jnp.dot(exc, wimg_ref[...], preferred_element_type=jnp.float32)
        + bimg_ref[...])

    # Final tensors written directly (no wrapper-side slicing afterwards).
    if tab.dtype == jnp.bfloat16:
        # bf16 VALU on v6e/v7x: gate in bf16, halves VPU/vreg pressure.
        tab_gated_ref[...] = tab * tab_g.astype(tab.dtype)
        img_gated_ref[...] = img * img_g.astype(img.dtype)
    else:
        tab_gated_ref[...] = (tab.astype(jnp.float32) * tab_g).astype(tab_gated_ref.dtype)
        img_gated_ref[...] = (img.astype(jnp.float32) * img_g).astype(img_gated_ref.dtype)
    img_gate_ref[...] = img_g.astype(img_gate_ref.dtype)


# --------------------------------------------------------------------------- #
# VMEM sizing helpers
# --------------------------------------------------------------------------- #
def _vmem_capacity_bytes():
    """Per-TensorCore VMEM capacity; conservative (v7x) fallback."""
    try:
        cap = int(pltpu.get_tpu_info().vmem_capacity_bytes)
        if cap > 0:
            return cap
    except Exception:
        pass
    return 64 * 1024 * 1024


def _padded_vmem_bytes(shape, dtype):
    """Bytes a 2-D buffer occupies in VMEM with (8, 128) layout padding."""
    r, c = shape
    r_p = max(8, ((r + 7) // 8) * 8)
    c_p = ((c + 127) // 128) * 128
    return r_p * c_p * jnp.dtype(dtype).itemsize


def _per_row_bytes(dim_tab, dim_img, dim_out_p, act_itemsize):
    dim = dim_tab + dim_img
    stream_in = 2 * dim * act_itemsize              # tab+img, double-buffered
    stream_out = 2 * (dim + dim_img) * act_itemsize  # 3 outputs, double-buffered
    interm = (dim_out_p + dim) * 4                   # f32 excitation + gates
    return stream_in + stream_out + interm


def _choose_tile_b(b, dim_tab, dim_img, dim_out_p, act_itemsize,
                   param_vmem_bytes, sublane, budget):
    per_row = _per_row_bytes(dim_tab, dim_img, dim_out_p, act_itemsize)
    avail = max(budget - param_vmem_bytes, per_row * sublane)
    tile = min(int(avail // per_row), 2048, b)
    if tile >= b:
        return b
    return max(sublane, (tile // sublane) * sublane)


# --------------------------------------------------------------------------- #
# Wrapper
# --------------------------------------------------------------------------- #
def mmtm_bi_forward(tab_feat, img_feat, params, *, tile_b=None):
    """Pallas forward of MMTMBi. params hold pre-transposed / padded weights."""
    b, dim_tab = tab_feat.shape
    _, dim_img = img_feat.shape
    dim = dim_tab + dim_img
    dim_out_p = params["wsq_tab"].shape[1]           # already padded to 128x
    act_dtype = tab_feat.dtype
    act_itemsize = jnp.dtype(act_dtype).itemsize
    sublane = 16 if act_dtype == jnp.bfloat16 else 8

    # Resident-parameter VMEM footprint (single-buffered via pl.Buffered(1)).
    param_vmem = sum(_padded_vmem_bytes(v.shape, v.dtype) for v in params.values())
    param_hbm = sum(int(v.size) * jnp.dtype(v.dtype).itemsize for v in params.values())

    vmem_cap = _vmem_capacity_bytes()
    budget = max(int(0.4 * vmem_cap), 8 * 1024 * 1024)   # ~25 MiB v7x, ~51 MiB v5e/v6e

    if tile_b is None:
        tile_b = _choose_tile_b(b, dim_tab, dim_img, dim_out_p, act_itemsize,
                                param_vmem, sublane, budget)
    tile_b = min(tile_b, b)
    if tile_b < b:
        tile_b = max(sublane, (tile_b // sublane) * sublane)
    grid = (pl.cdiv(b, tile_b),)

    # Actual working-set footprint for the chosen tile; derive vmem_limit.
    footprint = param_vmem + tile_b * _per_row_bytes(dim_tab, dim_img, dim_out_p,
                                                     act_itemsize)
    vmem_limit = min(int(0.9 * vmem_cap),
                     max(32 * 1024 * 1024, footprint + footprint // 4))
    if footprint > vmem_limit:
        raise ValueError(
            f"MMTMBi working set ({footprint} B) exceeds VMEM limit "
            f"({vmem_limit} B); reduce tile_b or model dims.")

    flops = 4 * b * dim * dim_out_p                   # split squeeze + 2 gate matmuls
    transcendentals = b * dim                         # sigmoids
    bytes_accessed = (b * dim * act_itemsize          # tab + img in
                      + param_hbm                     # resident weights/biases
                      + b * (dim + dim_img) * act_itemsize)   # 3 outputs

    out_shape = (
        jax.ShapeDtypeStruct((b, dim_tab), act_dtype),   # tab * tab_gate
        jax.ShapeDtypeStruct((b, dim_img), act_dtype),   # img * img_gate
        jax.ShapeDtypeStruct((b, dim_img), act_dtype),   # img_gate
    )
    out_specs = (
        pl.BlockSpec((tile_b, dim_tab), lambda i: (i, 0)),
        pl.BlockSpec((tile_b, dim_img), lambda i: (i, 0)),
        pl.BlockSpec((tile_b, dim_img), lambda i: (i, 0)),
    )
    compiler_params = pltpu.CompilerParams(
        dimension_semantics=("parallel",),            # shard batch across TCs (v7x)
        vmem_limit_bytes=vmem_limit,
    )
    cost = pl.CostEstimate(flops=flops, transcendentals=transcendentals,
                           bytes_accessed=bytes_accessed)

    def _make_call(single_buffer_weights):
        def wspec(shape):
            if single_buffer_weights:
                return pl.BlockSpec(shape, lambda i: (0, 0),
                                    pipeline_mode=pl.Buffered(1))
            return pl.BlockSpec(shape, lambda i: (0, 0))

        in_specs = [
            pl.BlockSpec((tile_b, dim_tab), lambda i: (i, 0)),   # tab (streamed)
            pl.BlockSpec((tile_b, dim_img), lambda i: (i, 0)),   # img (streamed)
            wspec((dim_tab, dim_out_p)),                         # Wsq[:dim_tab]
            wspec((dim_img, dim_out_p)),                         # Wsq[dim_tab:]
            wspec((1, dim_out_p)),                               # bsq
            wspec((dim_out_p, dim_tab)),                         # Wtab
            wspec((1, dim_tab)),                                 # btab
            wspec((dim_out_p, dim_img)),                         # Wimg
            wspec((1, dim_img)),                                 # bimg
        ]
        return pl.pallas_call(
            _mmtm_kernel,
            grid=grid,
            in_specs=in_specs,
            out_specs=out_specs,
            out_shape=out_shape,
            compiler_params=compiler_params,
            cost_estimate=cost,
        )

    args = (tab_feat, img_feat,
            params["wsq_tab"], params["wsq_img"], params["bsq"],
            params["wtab"], params["btab"], params["wimg"], params["bimg"])

    try:
        tab_gated, img_gated, img_gate = _make_call(True)(*args)
    except Exception:
        # Fallback: default (double) buffering for the resident weights.
        tab_gated, img_gated, img_gate = _make_call(False)(*args)

    return tab_gated, img_gated, img_gate


# --------------------------------------------------------------------------- #
# Params (PyTorch-Linear-style init, pre-transposed + MXU-aligned layout)
# --------------------------------------------------------------------------- #
def init_mmtm_params(key, dim_tab, dim_img, ratio=4, dtype=jnp.float32,
                     mxu_align=128):
    """Weights stored pre-transposed as (in, out); Wsq split per modality.

    dim_out is zero-padded up to a multiple of `mxu_align` (128 works on all
    generations). Semantically neutral: padded bsq entries are 0 so
    relu(0) = 0, and the corresponding padded rows of Wtab/Wimg are 0.
    """
    dim = dim_tab + dim_img
    dim_out = int(2 * dim / ratio)
    dim_out_p = mxu_align * pl.cdiv(dim_out, mxu_align) if mxu_align else dim_out
    keys = jax.random.split(key, 6)

    def uni(k, shape, fan_in):
        bound = 1.0 / math.sqrt(fan_in)
        return jax.random.uniform(k, shape, jnp.float32, -bound, bound)

    wsq = uni(keys[0], (dim, dim_out), dim)
    bsq = uni(keys[1], (1, dim_out), dim)
    wtab = uni(keys[2], (dim_out, dim_tab), dim_out)
    btab = uni(keys[3], (1, dim_tab), dim_out)
    wimg = uni(keys[4], (dim_out, dim_img), dim_out)
    bimg = uni(keys[5], (1, dim_img), dim_out)

    pad = dim_out_p - dim_out
    if pad:
        wsq = jnp.pad(wsq, ((0, 0), (0, pad)))
        bsq = jnp.pad(bsq, ((0, 0), (0, pad)))
        wtab = jnp.pad(wtab, ((0, pad), (0, 0)))
        wimg = jnp.pad(wimg, ((0, pad), (0, 0)))

    return {
        "wsq_tab": wsq[:dim_tab].astype(dtype),
        "wsq_img": wsq[dim_tab:].astype(dtype),
        "bsq": bsq,                     # f32 (added to the f32 accumulator)
        "wtab": wtab.astype(dtype),
        "btab": btab,                   # f32
        "wimg": wimg.astype(dtype),
        "bimg": bimg,                   # f32
    }


def mmtm_bi_reference(tab_feat, img_feat, params):
    """Pure-JAX reference mirroring the PyTorch forward."""
    excitation = jax.nn.relu(tab_feat @ params["wsq_tab"]
                             + img_feat @ params["wsq_img"]
                             + params["bsq"])
    tab_gate = jax.nn.sigmoid(excitation @ params["wtab"] + params["btab"])
    img_gate = jax.nn.sigmoid(excitation @ params["wimg"] + params["bimg"])
    return tab_feat * tab_gate, img_feat * img_gate, img_gate


# --------------------------------------------------------------------------- #
# Self-test
# --------------------------------------------------------------------------- #
if __name__ == "__main__":
    B, DIM_TAB, DIM_IMG = 16, 32, 32

    key = jax.random.PRNGKey(0)
    k_tab, k_img, k_par = jax.random.split(key, 3)

    tab_feat = jax.random.normal(k_tab, (B, DIM_TAB), jnp.float32)
    img_feat = jax.random.normal(k_img, (B, DIM_IMG), jnp.float32)
    params = init_mmtm_params(k_par, DIM_TAB, DIM_IMG, ratio=4)

    ref_tab, ref_img, ref_gate = mmtm_bi_reference(tab_feat, img_feat, params)

    # tile_b=8 exercises a 2-step pipelined batch grid at this small size.
    tab_out, img_out, img_gate = mmtm_bi_forward(tab_feat, img_feat, params,
                                                 tile_b=8)
    jax.block_until_ready((tab_out, img_out, img_gate))
    assert jnp.allclose(tab_out, ref_tab, atol=1e-5, rtol=1e-5)
    assert jnp.allclose(img_out, ref_img, atol=1e-5, rtol=1e-5)
    assert jnp.allclose(img_gate, ref_gate, atol=1e-5, rtol=1e-5)

    # Also exercise the default (auto-sized, single grid step) tile path.
    tab_out2, img_out2, img_gate2 = mmtm_bi_forward(tab_feat, img_feat, params)
    jax.block_until_ready((tab_out2, img_out2, img_gate2))
    assert jnp.allclose(tab_out2, ref_tab, atol=1e-5, rtol=1e-5)
    assert jnp.allclose(img_out2, ref_img, atol=1e-5, rtol=1e-5)
    assert jnp.allclose(img_gate2, ref_gate, atol=1e-5, rtol=1e-5)

    print("KERNEL_OK")
</pallas_src>

<mosaic_0001>
module attributes {stable_mosaic.version = 11 : i64} {
  func.func @_mmtm_kernel(%arg0: i32, %arg1: memref<8x32xf32, #tpu.memory_space<vmem>>, %arg2: memref<8x32xf32, #tpu.memory_space<vmem>>, %arg3: memref<32x128xf32, #tpu.memory_space<vmem>>, %arg4: memref<32x128xf32, #tpu.memory_space<vmem>>, %arg5: memref<1x128xf32, #tpu.memory_space<vmem>>, %arg6: memref<128x32xf32, #tpu.memory_space<vmem>>, %arg7: memref<1x32xf32, #tpu.memory_space<vmem>>, %arg8: memref<128x32xf32, #tpu.memory_space<vmem>>, %arg9: memref<1x32xf32, #tpu.memory_space<vmem>>, %arg10: memref<8x32xf32, #tpu.memory_space<vmem>>, %arg11: memref<8x32xf32, #tpu.memory_space<vmem>>, %arg12: memref<8x32xf32, #tpu.memory_space<vmem>>) attributes {dimension_semantics = [#tpu.dimension_semantics<parallel>], iteration_bounds = array<i64: 2>, scalar_prefetch = 0 : i64, scratch_operands = 0 : i64, tpu.core_type = #tpu.core_type<tc>, window_params = [{transform_indices = @transform_0, window_bounds = array<i64: 8, 32>}, {transform_indices = @transform_1, window_bounds = array<i64: 8, 32>}, {pipeline_mode = #tpu.pipeline_mode<synchronous>, transform_indices = @transform_2, window_bounds = array<i64: 32, 128>}, {pipeline_mode = #tpu.pipeline_mode<synchronous>, transform_indices = @transform_3, window_bounds = array<i64: 32, 128>}, {pipeline_mode = #tpu.pipeline_mode<synchronous>, transform_indices = @transform_4, window_bounds = array<i64: 1, 128>}, {pipeline_mode = #tpu.pipeline_mode<synchronous>, transform_indices = @transform_5, window_bounds = array<i64: 128, 32>}, {pipeline_mode = #tpu.pipeline_mode<synchronous>, transform_indices = @transform_6, window_bounds = array<i64: 1, 32>}, {pipeline_mode = #tpu.pipeline_mode<synchronous>, transform_indices = @transform_7, window_bounds = array<i64: 128, 32>}, {pipeline_mode = #tpu.pipeline_mode<synchronous>, transform_indices = @transform_8, window_bounds = array<i64: 1, 32>}, {transform_indices = @transform_9, window_bounds = array<i64: 8, 32>}, {transform_indices = @transform_10, window_bounds = array<i64: 8, 32>}, {transform_indices = @transform_11, window_bounds = array<i64: 8, 32>}]} {
    %c0 = arith.constant 0 : index
    %c0_0 = arith.constant 0 : index
    %0 = vector.load %arg1[%c0, %c0_0] : memref<8x32xf32, #tpu.memory_space<vmem>>, vector<8x32xf32>
    %c0_1 = arith.constant 0 : index
    %c0_2 = arith.constant 0 : index
    %1 = vector.load %arg2[%c0_1, %c0_2] : memref<8x32xf32, #tpu.memory_space<vmem>>, vector<8x32xf32>
    %c0_3 = arith.constant 0 : index
    %c0_4 = arith.constant 0 : index
    %2 = vector.load %arg3[%c0_3, %c0_4] : memref<32x128xf32, #tpu.memory_space<vmem>>, vector<32x128xf32>
    %cst = arith.constant dense<0.000000e+00> : vector<8x128xf32>
    %3 = tpu.matmul %0, %2, %cst {dimension_numbers = #tpu.dot_dimension_numbers<[1], [0], [0], [1], [0, 0, 1, 1], [], []>} : vector<8x32xf32>, vector<32x128xf32>, vector<8x128xf32> -> vector<8x128xf32>
    %c0_5 = arith.constant 0 : index
    %c0_6 = arith.constant 0 : index
    %4 = vector.load %arg4[%c0_5, %c0_6] : memref<32x128xf32, #tpu.memory_space<vmem>>, vector<32x128xf32>
    %cst_7 = arith.constant dense<0.000000e+00> : vector<8x128xf32>
    %5 = tpu.matmul %1, %4, %cst_7 {dimension_numbers = #tpu.dot_dimension_numbers<[1], [0], [0], [1], [0, 0, 1, 1], [], []>} : vector<8x32xf32>, vector<32x128xf32>, vector<8x128xf32> -> vector<8x128xf32>
    %6 = arith.addf %3, %5 : vector<8x128xf32>
    %c0_8 = arith.constant 0 : index
    %c0_9 = arith.constant 0 : index
    %7 = vector.load %arg5[%c0_8, %c0_9] : memref<1x128xf32, #tpu.memory_space<vmem>>, vector<1x128xf32>
    %8 = vector.broadcast %7 : vector<1x128xf32> to vector<8x128xf32>
    %9 = arith.addf %6, %8 : vector<8x128xf32>
    %cst_10 = arith.constant 0.000000e+00 : f32
    %10 = vector.broadcast %cst_10 : f32 to vector<8x128xf32>
    %11 = arith.maximumf %9, %10 : vector<8x128xf32>
    %c0_11 = arith.constant 0 : index
    %c0_12 = arith.constant 0 : index
    %12 = vector.load %arg6[%c0_11, %c0_12] : memref<128x32xf32, #tpu.memory_space<vmem>>, vector<128x32xf32>
    %cst_13 = arith.constant dense<0.000000e+00> : vector<8x32xf32>
    %13 = tpu.matmul %11, %12, %cst_13 {dimension_numbers = #tpu.dot_dimension_numbers<[1], [0], [0], [1], [0, 0, 1, 1], [], []>} : vector<8x128xf32>, vector<128x32xf32>, vector<8x32xf32> -> vector<8x32xf32>
    %c0_14 = arith.constant 0 : index
    %c0_15 = arith.constant 0 : index
    %14 = vector.load %arg7[%c0_14, %c0_15] : memref<1x32xf32, #tpu.memory_space<vmem>>, vector<1x32xf32>
    %15 = vector.broadcast %14 : vector<1x32xf32> to vector<8x32xf32>
    %16 = arith.addf %13, %15 : vector<8x32xf32>
    %17 = arith.negf %16 : vector<8x32xf32>
    %18 = math.exp %17 : vector<8x32xf32>
    %cst_16 = arith.constant 1.000000e+00 : f32
    %19 = vector.broadcast %cst_16 : f32 to vector<8x32xf32>
    %20 = arith.addf %19, %18 : vector<8x32xf32>
    %21 = arith.divf %19, %20 : vector<8x32xf32>
    %c0_17 = arith.constant 0 : index
    %c0_18 = arith.constant 0 : index
    %22 = vector.load %arg8[%c0_17, %c0_18] : memref<128x32xf32, #tpu.memory_space<vmem>>, vector<128x32xf32>
    %cst_19 = arith.constant dense<0.000000e+00> : vector<8x32xf32>
    %23 = tpu.matmul %11, %22, %cst_19 {dimension_numbers = #tpu.dot_dimension_numbers<[1], [0], [0], [1], [0, 0, 1, 1], [], []>} : vector<8x128xf32>, vector<128x32xf32>, vector<8x32xf32> -> vector<8x32xf32>
    %c0_20 = arith.constant 0 : index
    %c0_21 = arith.constant 0 : index
    %24 = vector.load %arg9[%c0_20, %c0_21] : memref<1x32xf32, #tpu.memory_space<vmem>>, vector<1x32xf32>
    %25 = vector.broadcast %24 : vector<1x32xf32> to vector<8x32xf32>
    %26 = arith.addf %23, %25 : vector<8x32xf32>
    %27 = arith.negf %26 : vector<8x32xf32>
    %28 = math.exp %27 : vector<8x32xf32>
    %cst_22 = arith.constant 1.000000e+00 : f32
    %29 = vector.broadcast %cst_22 : f32 to vector<8x32xf32>
    %30 = arith.addf %29, %28 : vector<8x32xf32>
    %31 = arith.divf %29, %30 : vector<8x32xf32>
    %32 = arith.mulf %0, %21 : vector<8x32xf32>
    %c0_23 = arith.constant 0 : index
    %c0_24 = arith.constant 0 : index
    %33 = vector.load %arg10[%c0_23, %c0_24] : memref<8x32xf32, #tpu.memory_space<vmem>>, vector<8x32xf32>
    tpu.vector_store %arg10[%c0_23, %c0_24], %32 {strides = array<i32>} : memref<8x32xf32, #tpu.memory_space<vmem>>, vector<8x32xf32>,
    %34 = arith.mulf %1, %31 : vector<8x32xf32>
    %c0_25 = arith.constant 0 : index
    %c0_26 = arith.constant 0 : index
    %35 = vector.load %arg11[%c0_25, %c0_26] : memref<8x32xf32, #tpu.memory_space<vmem>>, vector<8x32xf32>
    tpu.vector_store %arg11[%c0_25, %c0_26], %34 {strides = array<i32>} : memref<8x32xf32, #tpu.memory_space<vmem>>, vector<8x32xf32>,
    %c0_27 = arith.constant 0 : index
    %c0_28 = arith.constant 0 : index
    %36 = vector.load %arg12[%c0_27, %c0_28] : memref<8x32xf32, #tpu.memory_space<vmem>>, vector<8x32xf32>
    tpu.vector_store %arg12[%c0_27, %c0_28], %31 {strides = array<i32>} : memref<8x32xf32, #tpu.memory_space<vmem>>, vector<8x32xf32>,
    return
  }
  func.func @transform_0(%arg0: i32) -> (i32, i32) {
    %c0_i32 = arith.constant 0 : i32
    %c0_i32_0 = arith.constant 0 : i32
    return %arg0, %c0_i32 : i32, i32
  }
  func.func @transform_1(%arg0: i32) -> (i32, i32) {
    %c0_i32 = arith.constant 0 : i32
    %c0_i32_0 = arith.constant 0 : i32
    return %arg0, %c0_i32 : i32, i32
  }
  func.func @transform_2(%arg0: i32) -> (i32, i32) {
    %c0_i32 = arith.constant 0 : i32
    %c0_i32_0 = arith.constant 0 : i32
    %c0_i32_1 = arith.constant 0 : i32
    return %c0_i32, %c0_i32_0 : i32, i32
  }
  func.func @transform_3(%arg0: i32) -> (i32, i32) {
    %c0_i32 = arith.constant 0 : i32
    %c0_i32_0 = arith.constant 0 : i32
    %c0_i32_1 = arith.constant 0 : i32
    return %c0_i32, %c0_i32_0 : i32, i32
  }
  func.func @transform_4(%arg0: i32) -> (i32, i32) {
    %c0_i32 = arith.constant 0 : i32
    %c0_i32_0 = arith.constant 0 : i32
    %c0_i32_1 = arith.constant 0 : i32
    return %c0_i32, %c0_i32_0 : i32, i32
  }
  func.func @transform_5(%arg0: i32) -> (i32, i32) {
    %c0_i32 = arith.constant 0 : i32
    %c0_i32_0 = arith.constant 0 : i32
    %c0_i32_1 = arith.constant 0 : i32
    return %c0_i32, %c0_i32_0 : i32, i32
  }
  func.func @transform_6(%arg0: i32) -> (i32, i32) {
    %c0_i32 = arith.constant 0 : i32
    %c0_i32_0 = arith.constant 0 : i32
    %c0_i32_1 = arith.constant 0 : i32
    return %c0_i32, %c0_i32_0 : i32, i32
  }
  func.func @transform_7(%arg0: i32) -> (i32, i32) {
    %c0_i32 = arith.constant 0 : i32
    %c0_i32_0 = arith.constant 0 : i32
    %c0_i32_1 = arith.constant 0 : i32
    return %c0_i32, %c0_i32_0 : i32, i32
  }
  func.func @transform_8(%arg0: i32) -> (i32, i32) {
    %c0_i32 = arith.constant 0 : i32
    %c0_i32_0 = arith.constant 0 : i32
    %c0_i32_1 = arith.constant 0 : i32
    return %c0_i32, %c0_i32_0 : i32, i32
  }
  func.func @transform_9(%arg0: i32) -> (i32, i32) {
    %c0_i32 = arith.constant 0 : i32
    %c0_i32_0 = arith.constant 0 : i32
    return %arg0, %c0_i32 : i32, i32
  }
  func.func @transform_10(%arg0: i32) -> (i32, i32) {
    %c0_i32 = arith.constant 0 : i32
    %c0_i32_0 = arith.constant 0 : i32
    return %arg0, %c0_i32 : i32, i32
  }
  func.func @transform_11(%arg0: i32) -> (i32, i32) {
    %c0_i32 = arith.constant 0 : i32
    %c0_i32_0 = arith.constant 0 : i32
    return %arg0, %c0_i32 : i32, i32
  }
}

module attributes {stable_mosaic.version = 11 : i64} {
  func.func @_mmtm_kernel(%arg0: i32, %arg1: memref<8x32xf32, #tpu.memory_space<vmem>>, %arg2: memref<8x32xf32, #tpu.memory_space<vmem>>, %arg3: memref<32x128xf32, #tpu.memory_space<vmem>>, %arg4: memref<32x128xf32, #tpu.memory_space<vmem>>, %arg5: memref<1x128xf32, #tpu.memory_space<vmem>>, %arg6: memref<128x32xf32, #tpu.memory_space<vmem>>, %arg7: memref<1x32xf32, #tpu.memory_space<vmem>>, %arg8: memref<128x32xf32, #tpu.memory_space<vmem>>, %arg9: memref<1x32xf32, #tpu.memory_space<vmem>>, %arg10: memref<8x32xf32, #tpu.memory_space<vmem>>, %arg11: memref<8x32xf32, #tpu.memory_space<vmem>>, %arg12: memref<8x32xf32, #tpu.memory_space<vmem>>) attributes {dimension_semantics = [#tpu.dimension_semantics<parallel>], iteration_bounds = array<i64: 2>, scalar_prefetch = 0 : i64, scratch_operands = 0 : i64, tpu.core_type = #tpu.core_type<tc>, window_params = [{transform_indices = @transform_0, window_bounds = array<i64: 8, 32>}, {transform_indices = @transform_1, window_bounds = array<i64: 8, 32>}, {pipeline_mode = #tpu.pipeline_mode<synchronous>, transform_indices = @transform_2, window_bounds = array<i64: 32, 128>}, {pipeline_mode = #tpu.pipeline_mode<synchronous>, transform_indices = @transform_3, window_bounds = array<i64: 32, 128>}, {pipeline_mode = #tpu.pipeline_mode<synchronous>, transform_indices = @transform_4, window_bounds = array<i64: 1, 128>}, {pipeline_mode = #tpu.pipeline_mode<synchronous>, transform_indices = @transform_5, window_bounds = array<i64: 128, 32>}, {pipeline_mode = #tpu.pipeline_mode<synchronous>, transform_indices = @transform_6, window_bounds = array<i64: 1, 32>}, {pipeline_mode = #tpu.pipeline_mode<synchronous>, transform_indices = @transform_7, window_bounds = array<i64: 128, 32>}, {pipeline_mode = #tpu.pipeline_mode<synchronous>, transform_indices = @transform_8, window_bounds = array<i64: 1, 32>}, {transform_indices = @transform_9, window_bounds = array<i64: 8, 32>}, {transform_indices = @transform_10, window_bounds = array<i64: 8, 32>}, {transform_indices = @transform_11, window_bounds = array<i64: 8, 32>}]} {
    %c0 = arith.constant 0 : index
    %c0_0 = arith.constant 0 : index
    %0 = vector.load %arg1[%c0, %c0_0] : memref<8x32xf32, #tpu.memory_space<vmem>>, vector<8x32xf32>
    %c0_1 = arith.constant 0 : index
    %c0_2 = arith.constant 0 : index
    %1 = vector.load %arg2[%c0_1, %c0_2] : memref<8x32xf32, #tpu.memory_space<vmem>>, vector<8x32xf32>
    %c0_3 = arith.constant 0 : index
    %c0_4 = arith.constant 0 : index
    %2 = vector.load %arg3[%c0_3, %c0_4] : memref<32x128xf32, #tpu.memory_space<vmem>>, vector<32x128xf32>
    %cst = arith.constant dense<0.000000e+00> : vector<8x128xf32>
    %3 = tpu.matmul %0, %2, %cst {dimension_numbers = #tpu.dot_dimension_numbers<[1], [0], [0], [1], [0, 0, 1, 1], [], []>} : vector<8x32xf32>, vector<32x128xf32>, vector<8x128xf32> -> vector<8x128xf32>
    %c0_5 = arith.constant 0 : index
    %c0_6 = arith.constant 0 : index
    %4 = vector.load %arg4[%c0_5, %c0_6] : memref<32x128xf32, #tpu.memory_space<vmem>>, vector<32x128xf32>
    %cst_7 = arith.constant dense<0.000000e+00> : vector<8x128xf32>
    %5 = tpu.matmul %1, %4, %cst_7 {dimension_numbers = #tpu.dot_dimension_numbers<[1], [0], [0], [1], [0, 0, 1, 1], [], []>} : vector<8x32xf32>, vector<32x128xf32>, vector<8x128xf32> -> vector<8x128xf32>
    %6 = arith.addf %3, %5 : vector<8x128xf32>
    %c0_8 = arith.constant 0 : index
    %c0_9 = arith.constant 0 : index
    %7 = vector.load %arg5[%c0_8, %c0_9] : memref<1x128xf32, #tpu.memory_space<vmem>>, vector<1x128xf32>
    %8 = vector.broadcast %7 : vector<1x128xf32> to vector<8x128xf32>
    %9 = arith.addf %6, %8 : vector<8x128xf32>
    %cst_10 = arith.constant 0.000000e+00 : f32
    %10 = vector.broadcast %cst_10 : f32 to vector<8x128xf32>
    %11 = arith.maximumf %9, %10 : vector<8x128xf32>
    %c0_11 = arith.constant 0 : index
    %c0_12 = arith.constant 0 : index
    %12 = vector.load %arg6[%c0_11, %c0_12] : memref<128x32xf32, #tpu.memory_space<vmem>>, vector<128x32xf32>
    %cst_13 = arith.constant dense<0.000000e+00> : vector<8x32xf32>
    %13 = tpu.matmul %11, %12, %cst_13 {dimension_numbers = #tpu.dot_dimension_numbers<[1], [0], [0], [1], [0, 0, 1, 1], [], []>} : vector<8x128xf32>, vector<128x32xf32>, vector<8x32xf32> -> vector<8x32xf32>
    %c0_14 = arith.constant 0 : index
    %c0_15 = arith.constant 0 : index
    %14 = vector.load %arg7[%c0_14, %c0_15] : memref<1x32xf32, #tpu.memory_space<vmem>>, vector<1x32xf32>
    %15 = vector.broadcast %14 : vector<1x32xf32> to vector<8x32xf32>
    %16 = arith.addf %13, %15 : vector<8x32xf32>
    %17 = arith.negf %16 : vector<8x32xf32>
    %18 = math.exp %17 : vector<8x32xf32>
    %cst_16 = arith.constant 1.000000e+00 : f32
    %19 = vector.broadcast %cst_16 : f32 to vector<8x32xf32>
    %20 = arith.addf %19, %18 : vector<8x32xf32>
    %21 = arith.divf %19, %20 : vector<8x32xf32>
    %c0_17 = arith.constant 0 : index
    %c0_18 = arith.constant 0 : index
    %22 = vector.load %arg8[%c0_17, %c0_18] : memref<128x32xf32, #tpu.memory_space<vmem>>, vector<128x32xf32>
    %cst_19 = arith.constant dense<0.000000e+00> : vector<8x32xf32>
    %23 = tpu.matmul %11, %22, %cst_19 {dimension_numbers = #tpu.dot_dimension_numbers<[1], [0], [0], [1], [0, 0, 1, 1], [], []>} : vector<8x128xf32>, vector<128x32xf32>, vector<8x32xf32> -> vector<8x32xf32>
    %c0_20 = arith.constant 0 : index
    %c0_21 = arith.constant 0 : index
    %24 = vector.load %arg9[%c0_20, %c0_21] : memref<1x32xf32, #tpu.memory_space<vmem>>, vector<1x32xf32>
    %25 = vector.broadcast %24 : vector<1x32xf32> to vector<8x32xf32>
    %26 = arith.addf %23, %25 : vector<8x32xf32>
    %27 = arith.negf %26 : vector<8x32xf32>
    %28 = math.exp %27 : vector<8x32xf32>
    %cst_22 = arith.constant 1.000000e+00 : f32
    %29 = vector.broadcast %cst_22 : f32 to vector<8x32xf32>
    %30 = arith.addf %29, %28 : vector<8x32xf32>
    %31 = arith.divf %29, %30 : vector<8x32xf32>
    %32 = arith.mulf %0, %21 : vector<8x32xf32>
    %c0_23 = arith.constant 0 : index
    %c0_24 = arith.constant 0 : index
    %33 = vector.load %arg10[%c0_23, %c0_24] : memref<8x32xf32, #tpu.memory_space<vmem>>, vector<8x32xf32>
    tpu.vector_store %arg10[%c0_23, %c0_24], %32 {strides = array<i32>} : memref<8x32xf32, #tpu.memory_space<vmem>>, vector<8x32xf32>,
    %34 = arith.mulf %1, %31 : vector<8x32xf32>
    %c0_25 = arith.constant 0 : index
    %c0_26 = arith.constant 0 : index
    %35 = vector.load %arg11[%c0_25, %c0_26] : memref<8x32xf32, #tpu.memory_space<vmem>>, vector<8x32xf32>
    tpu.vector_store %arg11[%c0_25, %c0_26], %34 {strides = array<i32>} : memref<8x32xf32, #tpu.memory_space<vmem>>, vector<8x32xf32>,
    %c0_27 = arith.constant 0 : index
    %c0_28 = arith.constant 0 : index
    %36 = vector.load %arg12[%c0_27, %c0_28] : memref<8x32xf32, #tpu.memory_space<vmem>>, vector<8x32xf32>
    tpu.vector_store %arg12[%c0_27, %c0_28], %31 {strides = array<i32>} : memref<8x32xf32, #tpu.memory_space<vmem>>, vector<8x32xf32>,
    return
  }
  func.func @transform_0(%arg0: i32) -> (i32, i32) {
    %c0_i32 = arith.constant 0 : i32
    %c0_i32_0 = arith.constant 0 : i32
    return %arg0, %c0_i32 : i32, i32
  }
  func.func @transform_1(%arg0: i32) -> (i32, i32) {
    %c0_i32 = arith.constant 0 : i32
    %c0_i32_0 = arith.constant 0 : i32
    return %arg0, %c0_i32 : i32, i32
  }
  func.func @transform_2(%arg0: i32) -> (i32, i32) {
    %c0_i32 = arith.constant 0 : i32
    %c0_i32_0 = arith.constant 0 : i32
    %c0_i32_1 = arith.constant 0 : i32
    return %c0_i32, %c0_i32_0 : i32, i32
  }
  func.func @transform_3(%arg0: i32) -> (i32, i32) {
    %c0_i32 = arith.constant 0 : i32
    %c0_i32_0 = arith.constant 0 : i32
    %c0_i32_1 = arith.constant 0 : i32
    return %c0_i32, %c0_i32_0 : i32, i32
  }
  func.func @transform_4(%arg0: i32) -> (i32, i32) {
    %c0_i32 = arith.constant 0 : i32
    %c0_i32_0 = arith.constant 0 : i32
    %c0_i32_1 = arith.constant 0 : i32
    return %c0_i32, %c0_i32_0 : i32, i32
  }
  func.func @transform_5(%arg0: i32) -> (i32, i32) {
    %c0_i32 = arith.constant 0 : i32
    %c0_i32_0 = arith.constant 0 : i32
    %c0_i32_1 = arith.constant 0 : i32
    return %c0_i32, %c0_i32_0 : i32, i32
  }
  func.func @transform_6(%arg0: i32) -> (i32, i32) {
    %c0_i32 = arith.constant 0 : i32
    %c0_i32_0 = arith.constant 0 : i32
    %c0_i32_1 = arith.constant 0 : i32
    return %c0_i32, %c0_i32_0 : i32, i32
  }
  func.func @transform_7(%arg0: i32) -> (i32, i32) {
    %c0_i32 = arith.constant 0 : i32
    %c0_i32_0 = arith.constant 0 : i32
    %c0_i32_1 = arith.constant 0 : i32
    return %c0_i32, %c0_i32_0 : i32, i32
  }
  func.func @transform_8(%arg0: i32) -> (i32, i32) {
    %c0_i32 = arith.constant 0 : i32
    %c0_i32_0 = arith.constant 0 : i32
    %c0_i32_1 = arith.constant 0 : i32
    return %c0_i32, %c0_i32_0 : i32, i32
  }
  func.func @transform_9(%arg0: i32) -> (i32, i32) {
    %c0_i32 = arith.constant 0 : i32
    %c0_i32_0 = arith.constant 0 : i32
    return %arg0, %c0_i32 : i32, i32
  }
  func.func @transform_10(%arg0: i32) -> (i32, i32) {
    %c0_i32 = arith.constant 0 : i32
    %c0_i32_0 = arith.constant 0 : i32
    return %arg0, %c0_i32 : i32, i32
  }
  func.func @transform_11(%arg0: i32) -> (i32, i32) {
    %c0_i32 = arith.constant 0 : i32
    %c0_i32_0 = arith.constant 0 : i32
    return %arg0, %c0_i32 : i32, i32
  }
}

</mosaic_0001>

<bundles_post_ra>
// kernel: tpu_custom_call.1
= control target key start
LH: loop header
LB: loop body
LE: loop exit
PB: predicated region body
PF: predicated region fallthrough
CT: control target
= control target key end

     0   :  { %s1774_s0 = inlined_call_operand.vmem [shape: f32[16,32], index: 0, kind: input, shape index: {}]   ;;  %s1775_s1 = inlined_call_operand.vmem [shape: f32[16,32], index: 1, kind: input, shape index: {}]   ;;  %s1776_s2 = inlined_call_operand.vmem [shape: f32[32,128], index: 2, kind: input, shape index: {}]   ;;  %s1777_s3 = inlined_call_operand.vmem [shape: f32[32,128], index: 3, kind: input, shape index: {}]   ;;  %s1778_s4 = inlined_call_operand.vmem [shape: f32[1,128], index: 4, kind: input, shape index: {}]   ;;  %s1779_s5 = inlined_call_operand.vmem [shape: f32[128,32], index: 5, kind: input, shape index: {}]   ;;  %s1780_s6 = inlined_call_operand.vmem [shape: f32[1,32], index: 6, kind: input, shape index: {}]   ;;  %s1781_s7 = inlined_call_operand.vmem [shape: f32[128,32], index: 7, kind: input, shape index: {}]   ;;  %s1782_s8 = inlined_call_operand.vmem [shape: f32[1,32], index: 8, kind: input, shape index: {}]   ;;  %s1783_s9 = inlined_call_operand.hbm [shape: f32[16,32], index: 9, kind: output, shape index: {0}]   ;;  %s1784_s10 = inlined_call_operand.hbm [shape: f32[16,32], index: 10, kind: output, shape index: {1}]   ;;  %s1785_s11 = inlined_call_operand.hbm [shape: f32[16,32], index: 11, kind: output, shape index: {2}]  }
   0x1   :  { %1787 = sst [smem:[#allocation10_spill]] %s1774_s0 }
   0x2   :  { %1788 = sst [smem:[#allocation11_spill]] %s1775_s1 }
   0x3   :  { %1789 = sst [smem:[#allocation12_spill]] %s1776_s2 }
   0x4   :  { %1790 = sst [smem:[#allocation13_spill]] %s1777_s3 }
   0x5   :  { %1791 = sst [smem:[#allocation14_spill]] %s1778_s4 }
   0x6   :  { %1792 = sst [smem:[#allocation15_spill]] %s1779_s5 }
   0x7   :  { %17 = vsyncpa [#allocation3], 0 }
   0x8   :  { %19 = vsyncpa [#allocation3 + $0x1], 0 }
   0x9   :  { %20 = vsyncpa [#allocation5], 0 }
   0xa   :  { %22 = vsyncpa [#allocation5 + $0x1], 0  ;;  %s1438_s17 = smov 0   ;;  %s1440_s18 = smov 0  }
   0xb   :  { %s1442_s19 = smov 0   ;;  %s1444_s20 = smov 0  }
   0xc LB: > { %s1459_s21 = sadd.s32 4294967295, %s1370_s20   ;;  %s1786_s22 = sadd.s32 4294967294, %s1370_s20   ;;  %s1370_s20 = sphi %s1444_s20, %s1808_s20   ;;  %s1366_s19 = sphi %s1442_s19, %s1807_s19   ;;  %s1362_s18 = sphi %s1440_s18, %s1806_s18   ;;  %s1358_s17 = sphi %s1438_s17, %s1805_s17  }
   0xd   : > { %s1463_s23 = sadd.s32 1, %s1370_s20   ;;  %s234_s24 = sadd.s32 1, %s1366_s19 }
   0xe   : > { %s231_s25 = ssub.s32 %s1370_s20, %s1463_s23  ;;  %p244_p0 = scmp.ne.s32.totalorder %s1366_s19, %s1362_s18 }
   0xf   : > { %p232_p1 = scmp.eq.s32.totalorder %s231_s25, 0  ;;  %p245_p2 = scmp.eq.s32.totalorder %s1459_s21, 1 }
  0x10   : > { %p250_p3 = scmp.ne.s32.totalorder %s1362_s18, %s1358_s17  ;;  %p251_p4 = scmp.eq.s32.totalorder %s1786_s22, 1 }
  0x11   : > { %s1476_s26 = scalar_select %p232_p1, %s1366_s19, %s234_s24  }
  0x12   : > { %p1478_p5 = por %p245_p2, %p244_p0  ;;  %p1482_p6 = por %p251_p4, %p250_p3 }
  0x13   : > { %1793 = sst [smem:[#allocation9_spill]] %s1476_s26  ;;  %p971_p7 = scmp.ge.s32.totalorder %s1370_s20, 1 }
  0x14   : > { %p356_p8 = scmp.lt.s32.totalorder %s1370_s20, 3 }
  0x16   : > { %p357_p9 = pnand %p971_p7, %p356_p8 }
  0x17   : > { %s1796_s3 = sld [smem:[#allocation13_spill]] (!%p357_p9)  ;;  %s1797_s2 = sld [smem:[#allocation12_spill]] (!%p357_p9)  ;;  %v1372_v3 = vmov (!%p357_p9), 0.0|0.0   ;;  %vm1373_vm0 = vmmov (!%p357_p9), 0   ;;  %v1374_v11 = vmov (!%p357_p9), 0.0   ;;  %v682_v16 = vld [vmem:[%s1781_s7] sm:$0xff] (!%p357_p9) }
  0x18   : > { %360 = sbr.rel (%p357_p9) target bundleno = 565 (0x235), region = 56  ;;  %1128 = vmatprep.subr.bf16.mxu0 (!%p357_p9), %v1372_v3  ;;  %1134 = vmatprep.subr.bf16.mxu1 (!%p357_p9), %v1372_v3  ;;  %p409_p10 = scmp.lt.s32.totalorder (!%p357_p9), %s1459_s21, 1  ;;  %v683_v17 = vld [vmem:[%s1781_s7 + $0x8] sm:$0xff] (!%p357_p9)  ;;  %vm427_vm1 = vcmask (!%p357_p9), 261120   ;;  %v684_v24 = vld [vmem:[%s1781_s7 + $0x10] sm:$0xff] (!%p357_p9)  ;;  %v685_v25 = vld [vmem:[%s1781_s7 + $0x18] sm:$0xff] (!%p357_p9) }
  0x19   : > { %1044 = vmatprep.mubr.msk.f32.mxu0 (!%p357_p9), %vm1373_vm0, %v1374_v11  ;;  %1055 = vmatprep.mubr.msk.f32.mxu1 (!%p357_p9), %vm1373_vm0, %v1374_v11  ;;  %s1798_s5 = sld [smem:[#allocation15_spill]] (!%p357_p9)  ;;  %s1799_s1 = sld [smem:[#allocation11_spill]] (!%p357_p9)  ;;  %v1165_v21 = vpack.c.bf16 (!%p357_p9), %v683_v17, %v682_v16  ;;  %v1168_v27 = vpack.c.bf16 (!%p357_p9), %v685_v25, %v684_v24  ;;  %v686_v30 = vld [vmem:[%s1781_s7 + $0x20] sm:$0xff] (!%p357_p9)  ;;  %v687_v31 = vld [vmem:[%s1781_s7 + $0x28] sm:$0xff] (!%p357_p9)  ;;  %v688_v36 = vld [vmem:[%s1781_s7 + $0x30] sm:$0xff] (!%p357_p9) }
  0x1a   : > { %s1800_s0 = sld [smem:[#allocation10_spill]] (!%p357_p9)  ;;  %v1171_v33 = vpack.c.bf16 (!%p357_p9), %v687_v31, %v686_v30  ;;  %v689_v37 = vld [vmem:[%s1781_s7 + $0x38] sm:$0xff] (!%p357_p9)  ;;  %v690_v42 = vld [vmem:[%s1781_s7 + $0x40] sm:$0xff] (!%p357_p9)  ;;  %v691_v43 = vld [vmem:[%s1781_s7 + $0x48] sm:$0xff] (!%p357_p9)  ;;  %s1801_s4 = sld [smem:[#allocation14_spill]] (!%p357_p9) }
  0x1b   : > { %v1174_v39 = vpack.c.bf16 (!%p357_p9), %v689_v37, %v688_v36  ;;  %v1177_v45 = vpack.c.bf16 (!%p357_p9), %v691_v43, %v690_v42  ;;  %v692_v48 = vld [vmem:[%s1781_s7 + $0x50] sm:$0xff] (!%p357_p9)  ;;  %v693_v49 = vld [vmem:[%s1781_s7 + $0x58] sm:$0xff] (!%p357_p9)  ;;  %v694_v54 = vld [vmem:[%s1781_s7 + $0x60] sm:$0xff] (!%p357_p9) }
  0x1c   : > { %v1180_v51 = vpack.c.bf16 (!%p357_p9), %v693_v49, %v692_v48  ;;  %v695_v56 = vld [vmem:[%s1781_s7 + $0x68] sm:$0xff] (!%p357_p9)  ;;  %v696_v61 = vld [vmem:[%s1781_s7 + $0x70] sm:$0xff] (!%p357_p9)  ;;  %v697_v62 = vld [vmem:[%s1781_s7 + $0x78] sm:$0xff] (!%p357_p9) }
  0x1d   : > { %v423_v0 = vld [vmem:[%s1796_s3] sm:$0xff] (!%p357_p9)  ;;  %v424_v1 = vld [vmem:[%s1796_s3 + $0x8] sm:$0xff] (!%p357_p9)  ;;  %v425_v6 = vld [vmem:[%s1796_s3 + $0x10] sm:$0xff] (!%p357_p9)  ;;  %v1183_v57 = vpack.c.bf16 (!%p357_p9), %v695_v56, %v694_v54  ;;  %v1186_v63 = vpack.c.bf16 (!%p357_p9), %v697_v62, %v696_v61 }
  0x1e   : > { %v419_v2 = vld [vmem:[%s1797_s2] sm:$0xff] (!%p357_p9)  ;;  %v1129_v4 = vpack.c.bf16 (!%p357_p9), %v424_v1, %v423_v0  ;;  %v420_v5 = vld [vmem:[%s1797_s2 + $0x8] sm:$0xff] (!%p357_p9)  ;;  %v426_v7 = vld [vmem:[%s1796_s3 + $0x18] sm:$0xff] (!%p357_p9) }
  0x1f   : > { %v1135_v8 = vpack.c.bf16 %v420_v5, %v419_v2  ;;  %v421_v9 = vld [vmem:[%s1797_s2 + $0x10] sm:$0xff]  ;;  %v422_v10 = vld [vmem:[%s1797_s2 + $0x18] sm:$0xff]  ;;  %v1132_v12 = vpack.c.bf16 %v426_v7, %v425_v6  ;;  %s410_s16 = scalar_select %p409_p10, %s1459_s21, 1  ;;  %v583_v14 = vld [vmem:[%s1798_s5] sm:$0xff] }
  0x20   : > { %1130 = vmatpush3.bf16.msra.mxu0 %v1129_v4  ;;  %v1138_v13 = vpack.c.bf16 %v422_v10, %v421_v9  ;;  %v584_v15 = vld [vmem:[%s1798_s5 + $0x8] sm:$0xff]  ;;  %v585_v22 = vld [vmem:[%s1798_s5 + $0x10] sm:$0xff]  ;;  %v586_v23 = vld [vmem:[%s1798_s5 + $0x18] sm:$0xff] }
  0x21   : > { %1136 = vmatpush3.bf16.msra.mxu1 %v1135_v8  ;;  %1131 = vmatprep.subr.bf16.mxu0 %v1372_v3  ;;  %s975_s30 = sshll.u32 %s410_s16, 3  ;;  %v1141_v19 = vpack.c.bf16 %v584_v15, %v583_v14  ;;  %v1144_v26 = vpack.c.bf16 %v586_v23, %v585_v22  ;;  %v587_v28 = vld [vmem:[%s1798_s5 + $0x20] sm:$0xff]  ;;  %v588_v29 = vld [vmem:[%s1798_s5 + $0x28] sm:$0xff]  ;;  %v589_v34 = vld [vmem:[%s1798_s5 + $0x30] sm:$0xff]  ;;  %s987_s16 = sshll.u32 %s1459_s21, 7 }
  0x22   : > { %1137 = vmatprep.subr.bf16.mxu1 %v1372_v3  ;;  %s416_s24 = scalar_lea.vmem %s1799_s1, %s975_s30  ;;  %s412_s29 = scalar_lea.vmem %s1800_s0, %s975_s30  ;;  %v1147_v32 = vpack.c.bf16 %v588_v29, %v587_v28  ;;  %v590_v35 = vld [vmem:[%s1798_s5 + $0x38] sm:$0xff]  ;;  %v591_v40 = vld [vmem:[%s1798_s5 + $0x40] sm:$0xff]  ;;  %v592_v41 = vld [vmem:[%s1798_s5 + $0x48] sm:$0xff] }
  0x23   : > { %v1538_v18 = vld [vmem:[%s416_s24] sm:$0xff]  ;;  %v1150_v38 = vpack.c.bf16 %v590_v35, %v589_v34  ;;  %v1153_v44 = vpack.c.bf16 %v592_v41, %v591_v40  ;;  %v593_v46 = vld [vmem:[%s1798_s5 + $0x50] sm:$0xff]  ;;  %v594_v47 = vld [vmem:[%s1798_s5 + $0x58] sm:$0xff]  ;;  %s392_s24 = sand.u32 1, %s1362_s18   ;;  %s1664_s15 = scalar_lea.hbm %s1783_s9, %s987_s16 }
  0x24   : > { %1133 = vmatpush3.bf16.msra.mxu0 %v1132_v12  ;;  %v1540_v20 = vld [vmem:[%s412_s29] sm:$0xff]  ;;  %v1156_v50 = vpack.c.bf16 %v594_v47, %v593_v46  ;;  %v596_v53 = vld [vmem:[%s1798_s5 + $0x68] sm:$0xff]  ;;  %v597_v58 = vld [vmem:[%s1798_s5 + $0x70] sm:$0xff]  ;;  %s972_s25 = sshll.u32 %s392_s24, 3  ;;  %s1681_s1 = scalar_lea.hbm %s1785_s11, %s987_s16 }
  0x25   : > { %1139 = vmatpush3.bf16.msra.mxu1 %v1138_v13  ;;  %1140 = vmatprep.subr.bf16.mxu0 %v1372_v3  ;;  %v595_v52 = vld [vmem:[%s1798_s5 + $0x60] sm:$0xff]  ;;  %v598_v59 = vld [vmem:[%s1798_s5 + $0x78] sm:$0xff]  ;;  %s394_s22 = scalar_lea.vmem [#allocation2], %s972_s25  ;;  %s401_s3 = scalar_lea.vmem [#allocation4], %s972_s25 }
  0x26   : > { %1164 = vmatprep.subr.bf16.mxu1 %v1372_v3  ;;  %v1159_v55 = vpack.c.bf16 %v596_v53, %v595_v52  ;;  %v1162_v60 = vpack.c.bf16 %v598_v59, %v597_v58  ;;  %v979_v2 = vld [vmem:[%s1801_s4] ss:$0 sm:$0xff]  ;;  %s810_s2 = sshll.u32 %s394_s22, 4  ;;  %s823_s26 = sshll.u32 %s401_s3, 4  ;;  %s1666_s2 = int_to_ptr.vmem [resolvable:$true] %s810_s2  ;;  %s1674_s26 = int_to_ptr.vmem [resolvable:$true] %s823_s26 }
  0x27   : > { %1045 = vmatmul.mubr.msk.f32.vlgmr.msra.gmra.mrb[0].mxu0 %vm427_vm1, %v1538_v18  ;;  %v980_v8 = vld [vmem:[%s1780_s6] ss:$0 sm:$0xff]  ;;  %s408_s30 = scalar_lea.vmem [#allocation6], %s972_s25  ;;  %s1672_s25 = scalar_lea.hbm %s1784_s10, %s987_s16 }
  0x28   : > { %1056 = vmatmul.mubr.msk.f32.vlgmr.msra.gmra.mrb[0].mxu1 %vm427_vm1, %v1540_v20  ;;  %1142 = vmatpush3.bf16.msra.mxu0 %v1141_v19  ;;  %v982_v9 = vld [vmem:[%s1782_s8] ss:$0 sm:$0xff]  ;;  %s836_s12 = sshll.u32 %s408_s30, 4  ;;  %s787_s4 = scalar_lea.sflag [#allocation3], %s392_s24  ;;  %s1683_s12 = int_to_ptr.vmem [resolvable:$true] %s836_s12 }
  0x29   : > { %1166 = vmatpush3.bf16.msra.mxu1 %v1165_v21  ;;  %1143 = vmatprep.subr.bf16.mxu0 %v1372_v3  ;;  %s1248_s0 = scalar_lea.vmem %s1666_s2, 128  ;;  %s1375_s29 = smov [#allocation2]  }
  0x2a   : > { %1167 = vmatprep.subr.bf16.mxu1 %v1372_v3  ;;  %1090 = vmatprep.mubr.msk.f32.mxu0 %vm1373_vm0, %v1374_v11  ;;  %p1249_p11 = scmp.ne.s32.totalorder %s1666_s2, %s1248_s0  ;;  %s1252_s5 = sshll.u32 %s1375_s29, 4  ;;  %s1253_s5 = int_to_ptr.vmem [resolvable:$false] %s1252_s5 }
  0x2b   : > { %1125 = vmatprep.mubr.msk.f32.mxu1 %vm1373_vm0, %v1374_v11  ;;  %p1255_p0 = scmp.lt.s32.totalorder %s1666_s2, %s1253_s5 }
  0x2c   : > { %1145 = vmatpush3.bf16.msra.mxu0 %v1144_v26  ;;  %p1250_p12 = pnand %p1249_p11, %p1478_p5 }
  0x2d   : > { %1169 = vmatpush3.bf16.msra.mxu1 %v1168_v27  ;;  %1146 = vmatprep.subr.bf16.mxu0 %v1372_v3 }
  0x2e   : > { %1170 = vmatprep.subr.bf16.mxu1 %v1372_v3  ;;  %p1251_p13 = pneg %p1250_p12 }
  0x30   : > { %1148 = vmatpush3.bf16.msra.mxu0 %v1147_v32 }
  0x31   : > { %1172 = vmatpush3.bf16.msra.mxu1 %v1171_v33  ;;  %1149 = vmatprep.subr.bf16.mxu0 %v1372_v3 }
  0x32   : > { %1173 = vmatprep.subr.bf16.mxu1 %v1372_v3 }
  0x34   : > { %1151 = vmatpush3.bf16.msra.mxu0 %v1150_v38 }
  0x35   : > { %1175 = vmatpush3.bf16.msra.mxu1 %v1174_v39  ;;  %1152 = vmatprep.subr.bf16.mxu0 %v1372_v3 }
  0x36   : > { %1176 = vmatprep.subr.bf16.mxu1 %v1372_v3 }
  0x38   : > { %1154 = vmatpush3.bf16.msra.mxu0 %v1153_v44 }
  0x39   : > { %1178 = vmatpush3.bf16.msra.mxu1 %v1177_v45  ;;  %1155 = vmatprep.subr.bf16.mxu0 %v1372_v3 }
  0x3a   : > { %1179 = vmatprep.subr.bf16.mxu1 %v1372_v3 }
  0x3c   : > { %1157 = vmatpush3.bf16.msra.mxu0 %v1156_v50 }
  0x3d   : > { %1181 = vmatpush3.bf16.msra.mxu1 %v1180_v51  ;;  %1158 = vmatprep.subr.bf16.mxu0 %v1372_v3 }
  0x3e   : > { %1182 = vmatprep.subr.bf16.mxu1 %v1372_v3 }
  0x40   : > { %1160 = vmatpush3.bf16.msra.mxu0 %v1159_v55 }
  0x41   : > { %1184 = vmatpush3.bf16.msra.mxu1 %v1183_v57  ;;  %1161 = vmatprep.subr.bf16.mxu0 %v1372_v3 }
  0x42   : > { %1185 = vmatprep.subr.bf16.mxu1 %v1372_v3 }
  0x44   : > { %1163 = vmatpush3.bf16.msra.mxu0 %v1162_v60 }
  0x45   : > { %1187 = vmatpush3.bf16.msra.mxu1 %v1186_v63 }
  0xfa   : > { %v497_v0 = vpop.f32.mrb[0].mxu0 }
  0xfb   : > { %v570_v1 = vpop.f32.mrb[0].mxu1  ;;  %v1046_v4 = vpop.f32.mrb[1].mxu0 }
  0xfc   : > { %v571_v3 = vadd.f32 %v570_v1, %v497_v0  ;;  %v1057_v5 = vpop.f32.mrb[1].mxu1 }
  0xfe   : > { %v581_v6 = vadd.f32 %v979_v2, %v571_v3 }
 0x100   : > { %v582_v7 = vmax.f32 %v581_v6, 0.0 }
 0x102   : > { %1091 = vmatmul.mubr.f32.vlgmr.msra.gmra.mrb[2].mxu0 %v582_v7  ;;  %1126 = vmatmul.mubr.f32.vlgmr.msra.gmra.mrb[2].mxu1 %v582_v7 }
 0x1d5   : > { %v672_v10 = vpop.f32.mrb[2].mxu0  ;;  %v771_v11 = vpop.f32.mrb[2].mxu1 }
 0x1d6   : > { %v673_v12 = vadd.f32 %v980_v8, %v672_v10  ;;  %v772_v13 = vadd.f32 %v982_v9, %v771_v11  ;;  %v1092_v14 = vpop.f32.mrb[3].mxu0  ;;  %v1127_v15 = vpop.f32.mrb[3].mxu1 }
 0x1d8   : > { %v981_v16 = vmul.f32 -1.442695, %v673_v12  ;;  %v983_v17 = vmul.f32 -1.442695, %v772_v13 }
 0x1da   : > { %1240 = vpow2.f32 %v981_v16 }
 0x1db   : > { %1242 = vpow2.f32 %v983_v17 }
 0x1e4   : > { %v1241_v19 = vpop.eup %1240 }
 0x1e5   : > { %v1243_v21 = vpop.eup %1242  ;;  %v679_v22 = vadd.f32 1.0, %v1241_v19 }
 0x1e6   : > { %v778_v23 = vadd.f32 1.0, %v1243_v21 }
 0x1e7   : > { %1244 = vrcp.f32 %v679_v22 }
 0x1e8   : > { %1246 = vrcp.f32 %v778_v23 }
 0x1f1   : > { %v1245_v24 = vpop.eup %1244 }
 0x1f2   : > { %v1247_v25 = vpop.eup %1246  ;;  %v781_v26 = vmul.f32 %v1245_v24, %v1540_v20 }
 0x1f3   : > { %v783_v27 = vmul.f32 %v1247_v25, %v1538_v18  ;;  %785 = vst.msk [vmem:[%s408_s30] sm:$0xff] %vm427_vm1, %v1247_v25  ;;  %s1254_s30 = scalar_lea.vmem %s1253_s5, 256 }
 0x1f4   : > { %782 = vst.msk [vmem:[%s394_s22] sm:$0xff] %vm427_vm1, %v781_v26  ;;  %p1256_p1 = scmp.lt.s32.totalorder %s1254_s30, %s1248_s0 }
 0x1f5   : > { %784 = vst.msk [vmem:[%s401_s3] sm:$0xff] %vm427_vm1, %v783_v27 }
 0x1f6   : > { %p1257_p2 = por %p1256_p1, %p1255_p0 }
 0x1f8   : > { %p1258_p3 = pnand %p1257_p2, %p1251_p13 }
 0x1fa   : > { %1261 = shalt.err (!%p1258_p3)
}
 0x1fb   : > { %s1262_s24 = scalar_lea.hbm %s1664_s15, 128  ;;  %s1266_s3 = scalar_lea.hbm %s1783_s9, 256 }
 0x1fc   : > { %p1263_p4 = scmp.ne.s32.totalorder %s1664_s15, %s1262_s24  ;;  %p1267_p9 = scmp.lt.u32.totalorder %s1664_s15, %s1783_s9 }
 0x1fd   : > { %p1268_p10 = scmp.lt.u32.totalorder %s1266_s3, %s1262_s24  ;;  %p1270_p12 = scmp.lt.u32.totalorder %s1262_s24, %s1664_s15 }
 0x1fe   : > { %p1264_p7 = pnand %p1263_p4, %p1478_p5 }
 0x1ff   : > { %p1269_p11 = por %p1268_p10, %p1267_p9 }
 0x200   : > { %p1265_p8 = pneg %p1264_p7 }
 0x201   : > { %p1271_p13 = por %p1270_p12, %p1269_p11 }
 0x203   : > { %p1272_p0 = pnand %p1271_p13, %p1265_p8 }
 0x205   : > { %1275 = shalt.err (!%p1272_p0)
}
 0x206   : > { %1188 = dma.vmem_to_hbm [thread:$0]  (%p1478_p5), %s1666_s2, 128, %s1664_s15, %s787_s4  }
 0x207   : > { %s1802_s14 = sand.u32 1, %s1459_s21   ;;  %s1276_s29 = scalar_lea.vmem %s1674_s26, 128 }
 0x208   : > { %s1709_s0 = scalar_lea.sflag [#allocation5], %s1802_s14  ;;  %p1277_p1 = scmp.ne.s32.totalorder %s1674_s26, %s1276_s29 }
 0x209   : > { %s1376_s30 = smov [#allocation4]  }
 0x20a   : > { %p1278_p2 = pnand %p1277_p1, %p1478_p5  ;;  %s1280_s24 = sshll.u32 %s1376_s30, 4  ;;  %s1281_s24 = int_to_ptr.vmem [resolvable:$false] %s1280_s24 }
 0x20b   : > { %s1282_s16 = scalar_lea.vmem %s1281_s24, 256  ;;  %p1283_p4 = scmp.lt.s32.totalorder %s1674_s26, %s1281_s24 }
 0x20c   : > { %p1279_p3 = pneg %p1278_p2  ;;  %p1284_p7 = scmp.lt.s32.totalorder %s1282_s16, %s1276_s29 }
 0x20e   : > { %p1285_p8 = por %p1284_p7, %p1283_p4 }
 0x210   : > { %p1286_p9 = pnand %p1285_p8, %p1279_p3 }
 0x212   : > { %1289 = shalt.err (!%p1286_p9)
}
 0x213   : > { %s1290_s4 = scalar_lea.hbm %s1672_s25, 128  ;;  %s1294_s15 = scalar_lea.hbm %s1784_s10, 256 }
 0x214   : > { %p1291_p10 = scmp.ne.s32.totalorder %s1672_s25, %s1290_s4  ;;  %p1295_p13 = scmp.lt.u32.totalorder %s1672_s25, %s1784_s10 }
 0x215   : > { %p1296_p0 = scmp.lt.u32.totalorder %s1294_s15, %s1290_s4  ;;  %p1298_p2 = scmp.lt.u32.totalorder %s1290_s4, %s1672_s25 }
 0x216   : > { %p1292_p11 = pnand %p1291_p10, %p1478_p5 }
 0x217   : > { %p1297_p1 = por %p1296_p0, %p1295_p13 }
 0x218   : > { %p1293_p12 = pneg %p1292_p11 }
 0x219   : > { %p1299_p3 = por %p1298_p2, %p1297_p1 }
 0x21b   : > { %p1300_p4 = pnand %p1299_p3, %p1293_p12 }
 0x21d   : > { %1303 = shalt.err (!%p1300_p4)
}
 0x21e   : > { %1189 = dma.vmem_to_hbm [thread:$0]  (%p1478_p5), %s1674_s26, 128, %s1672_s25, %s1709_s0  }
 0x21f   : > { %s1304_s13 = scalar_lea.vmem %s1683_s12, 128  ;;  %s1377_s5 = smov [#allocation6]  }
 0x220   : > { %p1305_p7 = scmp.ne.s32.totalorder %s1683_s12, %s1304_s13  ;;  %s1308_s14 = sshll.u32 %s1377_s5, 4  ;;  %s1309_s14 = int_to_ptr.vmem [resolvable:$false] %s1308_s14 }
 0x221   : > { %s1310_s29 = scalar_lea.vmem %s1309_s14, 256  ;;  %p1311_p10 = scmp.lt.s32.totalorder %s1683_s12, %s1309_s14 }
 0x222   : > { %p1306_p8 = pnand %p1305_p7, %p1478_p5  ;;  %p1312_p11 = scmp.lt.s32.totalorder %s1310_s29, %s1304_s13 }
 0x224   : > { %p1307_p9 = pneg %p1306_p8  ;;  %p1313_p12 = por %p1312_p11, %p1311_p10 }
 0x226   : > { %p1314_p13 = pnand %p1313_p12, %p1307_p9 }
 0x228   : > { %1317 = shalt.err (!%p1314_p13)
}
 0x229   : > { %s1318_s26 = scalar_lea.hbm %s1681_s1, 128  ;;  %s1322_s24 = scalar_lea.hbm %s1785_s11, 256 }
 0x22a   : > { %p1319_p0 = scmp.ne.s32.totalorder %s1681_s1, %s1318_s26  ;;  %p1323_p3 = scmp.lt.u32.totalorder %s1681_s1, %s1785_s11 }
 0x22b   : > { %p1324_p4 = scmp.lt.u32.totalorder %s1322_s24, %s1318_s26  ;;  %p1326_p8 = scmp.lt.u32.totalorder %s1318_s26, %s1681_s1 }
 0x22c   : > { %p1320_p1 = pnand %p1319_p0, %p1478_p5 }
 0x22d   : > { %p1325_p7 = por %p1324_p4, %p1323_p3 }
 0x22e   : > { %p1321_p2 = pneg %p1320_p1 }
 0x22f   : > { %p1327_p9 = por %p1326_p8, %p1325_p7 }
 0x231   : > { %p1328_p10 = pnand %p1327_p9, %p1321_p2 }
 0x233   : > { %1331 = shalt.err (!%p1328_p10)
}
 0x234   : > { %1190 = dma.vmem_to_hbm [thread:$0]  (%p1478_p5), %s1683_s12, 128, %s1681_s1, %s1709_s0  }
 0x235 PF: > { %p1204_p11 = scmp.ge.s32.totalorder %s1370_s20, 2  ;;  %s848_s21 = sand.u32 1, %s1358_s17  }
 0x236   : > { %s849_s2 = scalar_lea.sflag [#allocation3], %s848_s21 }
 0x237   : > { %p1195_p12 = pnand %p1204_p11, %p1482_p6 }
 0x239   : > { %1349 = dma.done.wait (!%p1195_p12), %s849_s2, 128  }
 0x23a   : > { %1351 = vsyncadd (!%p1195_p12), %s849_s2, 4294967168  ;;  %s1803_s15 = sadd.s32 4294967294, %s1370_s20  }
 0x23b   : > { %s857_s22 = sand.u32 1, %s1803_s15  }
 0x23c   : > { %s858_s3 = scalar_lea.sflag [#allocation5], %s857_s22 }
 0x23d   : > { %1353 = dma.done.wait (!%p1195_p12), %s858_s3, 256  }
 0x23e   : > { %1355 = vsyncadd (!%p1195_p12), %s858_s3, 4294967040  ;;  %s1804_s1 = sld [smem:[#allocation9_spill]]  ;;  %p25_p5 = scmp.ge.s32.totalorder %s1463_s23, 4  }
 0x23f   : > { %s1805_s17 = smov %s1362_s18  ;;  %s1806_s18 = smov %s1366_s19 }
 0x240   : > { %s1808_s20 = smov %s1463_s23  ;;  %27 = sbr.rel (!%p25_p5) target bundleno = 12 (0xc), region = 126 }
 0x244   : > { %s1807_s19 = smov %s1804_s1 }
 0x247   :  { %872 = vsyncpa [#allocation3], 1 }
 0x248   :  { %874 = vsyncpa [#allocation3 + $0x1], 1 }
 0x249   :  { %875 = vsyncpa [#allocation5], 1 }
 0x24a   :  { %877 = vsyncpa [#allocation5 + $0x1], 1 }

// kernel: tpu_custom_call.1
= control target key start
LH: loop header
LB: loop body
LE: loop exit
PB: predicated region body
PF: predicated region fallthrough
CT: control target
= control target key end

     0   :  { %s1774_s0 = inlined_call_operand.vmem [shape: f32[16,32], index: 0, kind: input, shape index: {}]   ;;  %s1775_s1 = inlined_call_operand.vmem [shape: f32[16,32], index: 1, kind: input, shape index: {}]   ;;  %s1776_s2 = inlined_call_operand.vmem [shape: f32[32,128], index: 2, kind: input, shape index: {}]   ;;  %s1777_s3 = inlined_call_operand.vmem [shape: f32[32,128], index: 3, kind: input, shape index: {}]   ;;  %s1778_s4 = inlined_call_operand.vmem [shape: f32[1,128], index: 4, kind: input, shape index: {}]   ;;  %s1779_s5 = inlined_call_operand.vmem [shape: f32[128,32], index: 5, kind: input, shape index: {}]   ;;  %s1780_s6 = inlined_call_operand.vmem [shape: f32[1,32], index: 6, kind: input, shape index: {}]   ;;  %s1781_s7 = inlined_call_operand.vmem [shape: f32[128,32], index: 7, kind: input, shape index: {}]   ;;  %s1782_s8 = inlined_call_operand.vmem [shape: f32[1,32], index: 8, kind: input, shape index: {}]   ;;  %s1783_s9 = inlined_call_operand.hbm [shape: f32[16,32], index: 9, kind: output, shape index: {0}]   ;;  %s1784_s10 = inlined_call_operand.hbm [shape: f32[16,32], index: 10, kind: output, shape index: {1}]   ;;  %s1785_s11 = inlined_call_operand.hbm [shape: f32[16,32], index: 11, kind: output, shape index: {2}]  }
   0x1   :  { %1787 = sst [smem:[#allocation10_spill]] %s1774_s0 }
   0x2   :  { %1788 = sst [smem:[#allocation11_spill]] %s1775_s1 }
   0x3   :  { %1789 = sst [smem:[#allocation12_spill]] %s1776_s2 }
   0x4   :  { %1790 = sst [smem:[#allocation13_spill]] %s1777_s3 }
   0x5   :  { %1791 = sst [smem:[#allocation14_spill]] %s1778_s4 }
   0x6   :  { %1792 = sst [smem:[#allocation15_spill]] %s1779_s5 }
   0x7   :  { %17 = vsyncpa [#allocation3], 0 }
   0x8   :  { %19 = vsyncpa [#allocation3 + $0x1], 0 }
   0x9   :  { %20 = vsyncpa [#allocation5], 0 }
   0xa   :  { %22 = vsyncpa [#allocation5 + $0x1], 0  ;;  %s1438_s17 = smov 0   ;;  %s1440_s18 = smov 0  }
   0xb   :  { %s1442_s19 = smov 0   ;;  %s1444_s20 = smov 0  }
   0xc LB: > { %s1459_s21 = sadd.s32 4294967295, %s1370_s20   ;;  %s1786_s22 = sadd.s32 4294967294, %s1370_s20   ;;  %s1370_s20 = sphi %s1444_s20, %s1808_s20   ;;  %s1366_s19 = sphi %s1442_s19, %s1807_s19   ;;  %s1362_s18 = sphi %s1440_s18, %s1806_s18   ;;  %s1358_s17 = sphi %s1438_s17, %s1805_s17  }
   0xd   : > { %s1463_s23 = sadd.s32 1, %s1370_s20   ;;  %s234_s24 = sadd.s32 1, %s1366_s19 }
   0xe   : > { %s231_s25 = ssub.s32 %s1370_s20, %s1463_s23  ;;  %p244_p0 = scmp.ne.s32.totalorder %s1366_s19, %s1362_s18 }
   0xf   : > { %p232_p1 = scmp.eq.s32.totalorder %s231_s25, 0  ;;  %p245_p2 = scmp.eq.s32.totalorder %s1459_s21, 1 }
  0x10   : > { %p250_p3 = scmp.ne.s32.totalorder %s1362_s18, %s1358_s17  ;;  %p251_p4 = scmp.eq.s32.totalorder %s1786_s22, 1 }
  0x11   : > { %s1476_s26 = scalar_select %p232_p1, %s1366_s19, %s234_s24  }
  0x12   : > { %p1478_p5 = por %p245_p2, %p244_p0  ;;  %p1482_p6 = por %p251_p4, %p250_p3 }
  0x13   : > { %1793 = sst [smem:[#allocation9_spill]] %s1476_s26  ;;  %p971_p7 = scmp.ge.s32.totalorder %s1370_s20, 1 }
  0x14   : > { %p356_p8 = scmp.lt.s32.totalorder %s1370_s20, 3 }
  0x16   : > { %p357_p9 = pnand %p971_p7, %p356_p8 }
  0x17   : > { %s1796_s3 = sld [smem:[#allocation13_spill]] (!%p357_p9)  ;;  %s1797_s2 = sld [smem:[#allocation12_spill]] (!%p357_p9)  ;;  %v1372_v3 = vmov (!%p357_p9), 0.0|0.0   ;;  %vm1373_vm0 = vmmov (!%p357_p9), 0   ;;  %v1374_v11 = vmov (!%p357_p9), 0.0   ;;  %v682_v16 = vld [vmem:[%s1781_s7] sm:$0xff] (!%p357_p9) }
  0x18   : > { %360 = sbr.rel (%p357_p9) target bundleno = 565 (0x235), region = 56  ;;  %1128 = vmatprep.subr.bf16.mxu0 (!%p357_p9), %v1372_v3  ;;  %1134 = vmatprep.subr.bf16.mxu1 (!%p357_p9), %v1372_v3  ;;  %p409_p10 = scmp.lt.s32.totalorder (!%p357_p9), %s1459_s21, 1  ;;  %v683_v17 = vld [vmem:[%s1781_s7 + $0x8] sm:$0xff] (!%p357_p9)  ;;  %vm427_vm1 = vcmask (!%p357_p9), 261120   ;;  %v684_v24 = vld [vmem:[%s1781_s7 + $0x10] sm:$0xff] (!%p357_p9)  ;;  %v685_v25 = vld [vmem:[%s1781_s7 + $0x18] sm:$0xff] (!%p357_p9) }
  0x19   : > { %1044 = vmatprep.mubr.msk.f32.mxu0 (!%p357_p9), %vm1373_vm0, %v1374_v11  ;;  %1055 = vmatprep.mubr.msk.f32.mxu1 (!%p357_p9), %vm1373_vm0, %v1374_v11  ;;  %s1798_s5 = sld [smem:[#allocation15_spill]] (!%p357_p9)  ;;  %s1799_s1 = sld [smem:[#allocation11_spill]] (!%p357_p9)  ;;  %v1165_v21 = vpack.c.bf16 (!%p357_p9), %v683_v17, %v682_v16  ;;  %v1168_v27 = vpack.c.bf16 (!%p357_p9), %v685_v25, %v684_v24  ;;  %v686_v30 = vld [vmem:[%s1781_s7 + $0x20] sm:$0xff] (!%p357_p9)  ;;  %v687_v31 = vld [vmem:[%s1781_s7 + $0x28] sm:$0xff] (!%p357_p9)  ;;  %v688_v36 = vld [vmem:[%s1781_s7 + $0x30] sm:$0xff] (!%p357_p9) }
  0x1a   : > { %s1800_s0 = sld [smem:[#allocation10_spill]] (!%p357_p9)  ;;  %v1171_v33 = vpack.c.bf16 (!%p357_p9), %v687_v31, %v686_v30  ;;  %v689_v37 = vld [vmem:[%s1781_s7 + $0x38] sm:$0xff] (!%p357_p9)  ;;  %v690_v42 = vld [vmem:[%s1781_s7 + $0x40] sm:$0xff] (!%p357_p9)  ;;  %v691_v43 = vld [vmem:[%s1781_s7 + $0x48] sm:$0xff] (!%p357_p9)  ;;  %s1801_s4 = sld [smem:[#allocation14_spill]] (!%p357_p9) }
  0x1b   : > { %v1174_v39 = vpack.c.bf16 (!%p357_p9), %v689_v37, %v688_v36  ;;  %v1177_v45 = vpack.c.bf16 (!%p357_p9), %v691_v43, %v690_v42  ;;  %v692_v48 = vld [vmem:[%s1781_s7 + $0x50] sm:$0xff] (!%p357_p9)  ;;  %v693_v49 = vld [vmem:[%s1781_s7 + $0x58] sm:$0xff] (!%p357_p9)  ;;  %v694_v54 = vld [vmem:[%s1781_s7 + $0x60] sm:$0xff] (!%p357_p9) }
  0x1c   : > { %v1180_v51 = vpack.c.bf16 (!%p357_p9), %v693_v49, %v692_v48  ;;  %v695_v56 = vld [vmem:[%s1781_s7 + $0x68] sm:$0xff] (!%p357_p9)  ;;  %v696_v61 = vld [vmem:[%s1781_s7 + $0x70] sm:$0xff] (!%p357_p9)  ;;  %v697_v62 = vld [vmem:[%s1781_s7 + $0x78] sm:$0xff] (!%p357_p9) }
  0x1d   : > { %v423_v0 = vld [vmem:[%s1796_s3] sm:$0xff] (!%p357_p9)  ;;  %v424_v1 = vld [vmem:[%s1796_s3 + $0x8] sm:$0xff] (!%p357_p9)  ;;  %v425_v6 = vld [vmem:[%s1796_s3 + $0x10] sm:$0xff] (!%p357_p9)  ;;  %v1183_v57 = vpack.c.bf16 (!%p357_p9), %v695_v56, %v694_v54  ;;  %v1186_v63 = vpack.c.bf16 (!%p357_p9), %v697_v62, %v696_v61 }
  0x1e   : > { %v419_v2 = vld [vmem:[%s1797_s2] sm:$0xff] (!%p357_p9)  ;;  %v1129_v4 = vpack.c.bf16 (!%p357_p9), %v424_v1, %v423_v0  ;;  %v420_v5 = vld [vmem:[%s1797_s2 + $0x8] sm:$0xff] (!%p357_p9)  ;;  %v426_v7 = vld [vmem:[%s1796_s3 + $0x18] sm:$0xff] (!%p357_p9) }
  0x1f   : > { %v1135_v8 = vpack.c.bf16 %v420_v5, %v419_v2  ;;  %v421_v9 = vld [vmem:[%s1797_s2 + $0x10] sm:$0xff]  ;;  %v422_v10 = vld [vmem:[%s1797_s2 + $0x18] sm:$0xff]  ;;  %v1132_v12 = vpack.c.bf16 %v426_v7, %v425_v6  ;;  %s410_s16 = scalar_select %p409_p10, %s1459_s21, 1  ;;  %v583_v14 = vld [vmem:[%s1798_s5] sm:$0xff] }
  0x20   : > { %1130 = vmatpush3.bf16.msra.mxu0 %v1129_v4  ;;  %v1138_v13 = vpack.c.bf16 %v422_v10, %v421_v9  ;;  %v584_v15 = vld [vmem:[%s1798_s5 + $0x8] sm:$0xff]  ;;  %v585_v22 = vld [vmem:[%s1798_s5 + $0x10] sm:$0xff]  ;;  %v586_v23 = vld [vmem:[%s1798_s5 + $0x18] sm:$0xff] }
  0x21   : > { %1136 = vmatpush3.bf16.msra.mxu1 %v1135_v8  ;;  %1131 = vmatprep.subr.bf16.mxu0 %v1372_v3  ;;  %s975_s30 = sshll.u32 %s410_s16, 3  ;;  %v1141_v19 = vpack.c.bf16 %v584_v15, %v583_v14  ;;  %v1144_v26 = vpack.c.bf16 %v586_v23, %v585_v22  ;;  %v587_v28 = vld [vmem:[%s1798_s5 + $0x20] sm:$0xff]  ;;  %v588_v29 = vld [vmem:[%s1798_s5 + $0x28] sm:$0xff]  ;;  %v589_v34 = vld [vmem:[%s1798_s5 + $0x30] sm:$0xff]  ;;  %s987_s16 = sshll.u32 %s1459_s21, 7 }
  0x22   : > { %1137 = vmatprep.subr.bf16.mxu1 %v1372_v3  ;;  %s416_s24 = scalar_lea.vmem %s1799_s1, %s975_s30  ;;  %s412_s29 = scalar_lea.vmem %s1800_s0, %s975_s30  ;;  %v1147_v32 = vpack.c.bf16 %v588_v29, %v587_v28  ;;  %v590_v35 = vld [vmem:[%s1798_s5 + $0x38] sm:$0xff]  ;;  %v591_v40 = vld [vmem:[%s1798_s5 + $0x40] sm:$0xff]  ;;  %v592_v41 = vld [vmem:[%s1798_s5 + $0x48] sm:$0xff] }
  0x23   : > { %v1538_v18 = vld [vmem:[%s416_s24] sm:$0xff]  ;;  %v1150_v38 = vpack.c.bf16 %v590_v35, %v589_v34  ;;  %v1153_v44 = vpack.c.bf16 %v592_v41, %v591_v40  ;;  %v593_v46 = vld [vmem:[%s1798_s5 + $0x50] sm:$0xff]  ;;  %v594_v47 = vld [vmem:[%s1798_s5 + $0x58] sm:$0xff]  ;;  %s392_s24 = sand.u32 1, %s1362_s18   ;;  %s1664_s15 = scalar_lea.hbm %s1783_s9, %s987_s16 }
  0x24   : > { %1133 = vmatpush3.bf16.msra.mxu0 %v1132_v12  ;;  %v1540_v20 = vld [vmem:[%s412_s29] sm:$0xff]  ;;  %v1156_v50 = vpack.c.bf16 %v594_v47, %v593_v46  ;;  %v596_v53 = vld [vmem:[%s1798_s5 + $0x68] sm:$0xff]  ;;  %v597_v58 = vld [vmem:[%s1798_s5 + $0x70] sm:$0xff]  ;;  %s972_s25 = sshll.u32 %s392_s24, 3  ;;  %s1681_s1 = scalar_lea.hbm %s1785_s11, %s987_s16 }
  0x25   : > { %1139 = vmatpush3.bf16.msra.mxu1 %v1138_v13  ;;  %1140 = vmatprep.subr.bf16.mxu0 %v1372_v3  ;;  %v595_v52 = vld [vmem:[%s1798_s5 + $0x60] sm:$0xff]  ;;  %v598_v59 = vld [vmem:[%s1798_s5 + $0x78] sm:$0xff]  ;;  %s394_s22 = scalar_lea.vmem [#allocation2], %s972_s25  ;;  %s401_s3 = scalar_lea.vmem [#allocation4], %s972_s25 }
  0x26   : > { %1164 = vmatprep.subr.bf16.mxu1 %v1372_v3  ;;  %v1159_v55 = vpack.c.bf16 %v596_v53, %v595_v52  ;;  %v1162_v60 = vpack.c.bf16 %v598_v59, %v597_v58  ;;  %v979_v2 = vld [vmem:[%s1801_s4] ss:$0 sm:$0xff]  ;;  %s810_s2 = sshll.u32 %s394_s22, 4  ;;  %s823_s26 = sshll.u32 %s401_s3, 4  ;;  %s1666_s2 = int_to_ptr.vmem [resolvable:$true] %s810_s2  ;;  %s1674_s26 = int_to_ptr.vmem [resolvable:$true] %s823_s26 }
  0x27   : > { %1045 = vmatmul.mubr.msk.f32.vlgmr.msra.gmra.mrb[0].mxu0 %vm427_vm1, %v1538_v18  ;;  %v980_v8 = vld [vmem:[%s1780_s6] ss:$0 sm:$0xff]  ;;  %s408_s30 = scalar_lea.vmem [#allocation6], %s972_s25  ;;  %s1672_s25 = scalar_lea.hbm %s1784_s10, %s987_s16 }
  0x28   : > { %1056 = vmatmul.mubr.msk.f32.vlgmr.msra.gmra.mrb[0].mxu1 %vm427_vm1, %v1540_v20  ;;  %1142 = vmatpush3.bf16.msra.mxu0 %v1141_v19  ;;  %v982_v9 = vld [vmem:[%s1782_s8] ss:$0 sm:$0xff]  ;;  %s836_s12 = sshll.u32 %s408_s30, 4  ;;  %s787_s4 = scalar_lea.sflag [#allocation3], %s392_s24  ;;  %s1683_s12 = int_to_ptr.vmem [resolvable:$true] %s836_s12 }
  0x29   : > { %1166 = vmatpush3.bf16.msra.mxu1 %v1165_v21  ;;  %1143 = vmatprep.subr.bf16.mxu0 %v1372_v3  ;;  %s1248_s0 = scalar_lea.vmem %s1666_s2, 128  ;;  %s1375_s29 = smov [#allocation2]  }
  0x2a   : > { %1167 = vmatprep.subr.bf16.mxu1 %v1372_v3  ;;  %1090 = vmatprep.mubr.msk.f32.mxu0 %vm1373_vm0, %v1374_v11  ;;  %p1249_p11 = scmp.ne.s32.totalorder %s1666_s2, %s1248_s0  ;;  %s1252_s5 = sshll.u32 %s1375_s29, 4  ;;  %s1253_s5 = int_to_ptr.vmem [resolvable:$false] %s1252_s5 }
  0x2b   : > { %1125 = vmatprep.mubr.msk.f32.mxu1 %vm1373_vm0, %v1374_v11  ;;  %p1255_p0 = scmp.lt.s32.totalorder %s1666_s2, %s1253_s5 }
  0x2c   : > { %1145 = vmatpush3.bf16.msra.mxu0 %v1144_v26  ;;  %p1250_p12 = pnand %p1249_p11, %p1478_p5 }
  0x2d   : > { %1169 = vmatpush3.bf16.msra.mxu1 %v1168_v27  ;;  %1146 = vmatprep.subr.bf16.mxu0 %v1372_v3 }
  0x2e   : > { %1170 = vmatprep.subr.bf16.mxu1 %v1372_v3  ;;  %p1251_p13 = pneg %p1250_p12 }
  0x30   : > { %1148 = vmatpush3.bf16.msra.mxu0 %v1147_v32 }
  0x31   : > { %1172 = vmatpush3.bf16.msra.mxu1 %v1171_v33  ;;  %1149 = vmatprep.subr.bf16.mxu0 %v1372_v3 }
  0x32   : > { %1173 = vmatprep.subr.bf16.mxu1 %v1372_v3 }
  0x34   : > { %1151 = vmatpush3.bf16.msra.mxu0 %v1150_v38 }
  0x35   : > { %1175 = vmatpush3.bf16.msra.mxu1 %v1174_v39  ;;  %1152 = vmatprep.subr.bf16.mxu0 %v1372_v3 }
  0x36   : > { %1176 = vmatprep.subr.bf16.mxu1 %v1372_v3 }
  0x38   : > { %1154 = vmatpush3.bf16.msra.mxu0 %v1153_v44 }
  0x39   : > { %1178 = vmatpush3.bf16.msra.mxu1 %v1177_v45  ;;  %1155 = vmatprep.subr.bf16.mxu0 %v1372_v3 }
  0x3a   : > { %1179 = vmatprep.subr.bf16.mxu1 %v1372_v3 }
  0x3c   : > { %1157 = vmatpush3.bf16.msra.mxu0 %v1156_v50 }
  0x3d   : > { %1181 = vmatpush3.bf16.msra.mxu1 %v1180_v51  ;;  %1158 = vmatprep.subr.bf16.mxu0 %v1372_v3 }
  0x3e   : > { %1182 = vmatprep.subr.bf16.mxu1 %v1372_v3 }
  0x40   : > { %1160 = vmatpush3.bf16.msra.mxu0 %v1159_v55 }
  0x41   : > { %1184 = vmatpush3.bf16.msra.mxu1 %v1183_v57  ;;  %1161 = vmatprep.subr.bf16.mxu0 %v1372_v3 }
  0x42   : > { %1185 = vmatprep.subr.bf16.mxu1 %v1372_v3 }
  0x44   : > { %1163 = vmatpush3.bf16.msra.mxu0 %v1162_v60 }
  0x45   : > { %1187 = vmatpush3.bf16.msra.mxu1 %v1186_v63 }
  0xfa   : > { %v497_v0 = vpop.f32.mrb[0].mxu0 }
  0xfb   : > { %v570_v1 = vpop.f32.mrb[0].mxu1  ;;  %v1046_v4 = vpop.f32.mrb[1].mxu0 }
  0xfc   : > { %v571_v3 = vadd.f32 %v570_v1, %v497_v0  ;;  %v1057_v5 = vpop.f32.mrb[1].mxu1 }
  0xfe   : > { %v581_v6 = vadd.f32 %v979_v2, %v571_v3 }
 0x100   : > { %v582_v7 = vmax.f32 %v581_v6, 0.0 }
 0x102   : > { %1091 = vmatmul.mubr.f32.vlgmr.msra.gmra.mrb[2].mxu0 %v582_v7  ;;  %1126 = vmatmul.mubr.f32.vlgmr.msra.gmra.mrb[2].mxu1 %v582_v7 }
 0x1d5   : > { %v672_v10 = vpop.f32.mrb[2].mxu0  ;;  %v771_v11 = vpop.f32.mrb[2].mxu1 }
 0x1d6   : > { %v673_v12 = vadd.f32 %v980_v8, %v672_v10  ;;  %v772_v13 = vadd.f32 %v982_v9, %v771_v11  ;;  %v1092_v14 = vpop.f32.mrb[3].mxu0  ;;  %v1127_v15 = vpop.f32.mrb[3].mxu1 }
 0x1d8   : > { %v981_v16 = vmul.f32 -1.442695, %v673_v12  ;;  %v983_v17 = vmul.f32 -1.442695, %v772_v13 }
 0x1da   : > { %1240 = vpow2.f32 %v981_v16 }
 0x1db   : > { %1242 = vpow2.f32 %v983_v17 }
 0x1e4   : > { %v1241_v19 = vpop.eup %1240 }
 0x1e5   : > { %v1243_v21 = vpop.eup %1242  ;;  %v679_v22 = vadd.f32 1.0, %v1241_v19 }
 0x1e6   : > { %v778_v23 = vadd.f32 1.0, %v1243_v21 }
 0x1e7   : > { %1244 = vrcp.f32 %v679_v22 }
 0x1e8   : > { %1246 = vrcp.f32 %v778_v23 }
 0x1f1   : > { %v1245_v24 = vpop.eup %1244 }
 0x1f2   : > { %v1247_v25 = vpop.eup %1246  ;;  %v781_v26 = vmul.f32 %v1245_v24, %v1540_v20 }
 0x1f3   : > { %v783_v27 = vmul.f32 %v1247_v25, %v1538_v18  ;;  %785 = vst.msk [vmem:[%s408_s30] sm:$0xff] %vm427_vm1, %v1247_v25  ;;  %s1254_s30 = scalar_lea.vmem %s1253_s5, 256 }
 0x1f4   : > { %782 = vst.msk [vmem:[%s394_s22] sm:$0xff] %vm427_vm1, %v781_v26  ;;  %p1256_p1 = scmp.lt.s32.totalorder %s1254_s30, %s1248_s0 }
 0x1f5   : > { %784 = vst.msk [vmem:[%s401_s3] sm:$0xff] %vm427_vm1, %v783_v27 }
 0x1f6   : > { %p1257_p2 = por %p1256_p1, %p1255_p0 }
 0x1f8   : > { %p1258_p3 = pnand %p1257_p2, %p1251_p13 }
 0x1fa   : > { %1261 = shalt.err (!%p1258_p3)
}
 0x1fb   : > { %s1262_s24 = scalar_lea.hbm %s1664_s15, 128  ;;  %s1266_s3 = scalar_lea.hbm %s1783_s9, 256 }
 0x1fc   : > { %p1263_p4 = scmp.ne.s32.totalorder %s1664_s15, %s1262_s24  ;;  %p1267_p9 = scmp.lt.u32.totalorder %s1664_s15, %s1783_s9 }
 0x1fd   : > { %p1268_p10 = scmp.lt.u32.totalorder %s1266_s3, %s1262_s24  ;;  %p1270_p12 = scmp.lt.u32.totalorder %s1262_s24, %s1664_s15 }
 0x1fe   : > { %p1264_p7 = pnand %p1263_p4, %p1478_p5 }
 0x1ff   : > { %p1269_p11 = por %p1268_p10, %p1267_p9 }
 0x200   : > { %p1265_p8 = pneg %p1264_p7 }
 0x201   : > { %p1271_p13 = por %p1270_p12, %p1269_p11 }
 0x203   : > { %p1272_p0 = pnand %p1271_p13, %p1265_p8 }
 0x205   : > { %1275 = shalt.err (!%p1272_p0)
}
 0x206   : > { %1188 = dma.vmem_to_hbm [thread:$0]  (%p1478_p5), %s1666_s2, 128, %s1664_s15, %s787_s4  }
 0x207   : > { %s1802_s14 = sand.u32 1, %s1459_s21   ;;  %s1276_s29 = scalar_lea.vmem %s1674_s26, 128 }
 0x208   : > { %s1709_s0 = scalar_lea.sflag [#allocation5], %s1802_s14  ;;  %p1277_p1 = scmp.ne.s32.totalorder %s1674_s26, %s1276_s29 }
 0x209   : > { %s1376_s30 = smov [#allocation4]  }
 0x20a   : > { %p1278_p2 = pnand %p1277_p1, %p1478_p5  ;;  %s1280_s24 = sshll.u32 %s1376_s30, 4  ;;  %s1281_s24 = int_to_ptr.vmem [resolvable:$false] %s1280_s24 }
 0x20b   : > { %s1282_s16 = scalar_lea.vmem %s1281_s24, 256  ;;  %p1283_p4 = scmp.lt.s32.totalorder %s1674_s26, %s1281_s24 }
 0x20c   : > { %p1279_p3 = pneg %p1278_p2  ;;  %p1284_p7 = scmp.lt.s32.totalorder %s1282_s16, %s1276_s29 }
 0x20e   : > { %p1285_p8 = por %p1284_p7, %p1283_p4 }
 0x210   : > { %p1286_p9 = pnand %p1285_p8, %p1279_p3 }
 0x212   : > { %1289 = shalt.err (!%p1286_p9)
}
 0x213   : > { %s1290_s4 = scalar_lea.hbm %s1672_s25, 128  ;;  %s1294_s15 = scalar_lea.hbm %s1784_s10, 256 }
 0x214   : > { %p1291_p10 = scmp.ne.s32.totalorder %s1672_s25, %s1290_s4  ;;  %p1295_p13 = scmp.lt.u32.totalorder %s1672_s25, %s1784_s10 }
 0x215   : > { %p1296_p0 = scmp.lt.u32.totalorder %s1294_s15, %s1290_s4  ;;  %p1298_p2 = scmp.lt.u32.totalorder %s1290_s4, %s1672_s25 }
 0x216   : > { %p1292_p11 = pnand %p1291_p10, %p1478_p5 }
 0x217   : > { %p1297_p1 = por %p1296_p0, %p1295_p13 }
 0x218   : > { %p1293_p12 = pneg %p1292_p11 }
 0x219   : > { %p1299_p3 = por %p1298_p2, %p1297_p1 }
 0x21b   : > { %p1300_p4 = pnand %p1299_p3, %p1293_p12 }
 0x21d   : > { %1303 = shalt.err (!%p1300_p4)
}
 0x21e   : > { %1189 = dma.vmem_to_hbm [thread:$0]  (%p1478_p5), %s1674_s26, 128, %s1672_s25, %s1709_s0  }
 0x21f   : > { %s1304_s13 = scalar_lea.vmem %s1683_s12, 128  ;;  %s1377_s5 = smov [#allocation6]  }
 0x220   : > { %p1305_p7 = scmp.ne.s32.totalorder %s1683_s12, %s1304_s13  ;;  %s1308_s14 = sshll.u32 %s1377_s5, 4  ;;  %s1309_s14 = int_to_ptr.vmem [resolvable:$false] %s1308_s14 }
 0x221   : > { %s1310_s29 = scalar_lea.vmem %s1309_s14, 256  ;;  %p1311_p10 = scmp.lt.s32.totalorder %s1683_s12, %s1309_s14 }
 0x222   : > { %p1306_p8 = pnand %p1305_p7, %p1478_p5  ;;  %p1312_p11 = scmp.lt.s32.totalorder %s1310_s29, %s1304_s13 }
 0x224   : > { %p1307_p9 = pneg %p1306_p8  ;;  %p1313_p12 = por %p1312_p11, %p1311_p10 }
 0x226   : > { %p1314_p13 = pnand %p1313_p12, %p1307_p9 }
 0x228   : > { %1317 = shalt.err (!%p1314_p13)
}
 0x229   : > { %s1318_s26 = scalar_lea.hbm %s1681_s1, 128  ;;  %s1322_s24 = scalar_lea.hbm %s1785_s11, 256 }
 0x22a   : > { %p1319_p0 = scmp.ne.s32.totalorder %s1681_s1, %s1318_s26  ;;  %p1323_p3 = scmp.lt.u32.totalorder %s1681_s1, %s1785_s11 }
 0x22b   : > { %p1324_p4 = scmp.lt.u32.totalorder %s1322_s24, %s1318_s26  ;;  %p1326_p8 = scmp.lt.u32.totalorder %s1318_s26, %s1681_s1 }
 0x22c   : > { %p1320_p1 = pnand %p1319_p0, %p1478_p5 }
 0x22d   : > { %p1325_p7 = por %p1324_p4, %p1323_p3 }
 0x22e   : > { %p1321_p2 = pneg %p1320_p1 }
 0x22f   : > { %p1327_p9 = por %p1326_p8, %p1325_p7 }
 0x231   : > { %p1328_p10 = pnand %p1327_p9, %p1321_p2 }
 0x233   : > { %1331 = shalt.err (!%p1328_p10)
}
 0x234   : > { %1190 = dma.vmem_to_hbm [thread:$0]  (%p1478_p5), %s1683_s12, 128, %s1681_s1, %s1709_s0  }
 0x235 PF: > { %p1204_p11 = scmp.ge.s32.totalorder %s1370_s20, 2  ;;  %s848_s21 = sand.u32 1, %s1358_s17  }
 0x236   : > { %s849_s2 = scalar_lea.sflag [#allocation3], %s848_s21 }
 0x237   : > { %p1195_p12 = pnand %p1204_p11, %p1482_p6 }
 0x239   : > { %1349 = dma.done.wait (!%p1195_p12), %s849_s2, 128  }
 0x23a   : > { %1351 = vsyncadd (!%p1195_p12), %s849_s2, 4294967168  ;;  %s1803_s15 = sadd.s32 4294967294, %s1370_s20  }
 0x23b   : > { %s857_s22 = sand.u32 1, %s1803_s15  }
 0x23c   : > { %s858_s3 = scalar_lea.sflag [#allocation5], %s857_s22 }
 0x23d   : > { %1353 = dma.done.wait (!%p1195_p12), %s858_s3, 256  }
 0x23e   : > { %1355 = vsyncadd (!%p1195_p12), %s858_s3, 4294967040  ;;  %s1804_s1 = sld [smem:[#allocation9_spill]]  ;;  %p25_p5 = scmp.ge.s32.totalorder %s1463_s23, 4  }
 0x23f   : > { %s1805_s17 = smov %s1362_s18  ;;  %s1806_s18 = smov %s1366_s19 }
 0x240   : > { %s1808_s20 = smov %s1463_s23  ;;  %27 = sbr.rel (!%p25_p5) target bundleno = 12 (0xc), region = 126 }
 0x244   : > { %s1807_s19 = smov %s1804_s1 }
 0x247   :  { %872 = vsyncpa [#allocation3], 1 }
 0x248   :  { %874 = vsyncpa [#allocation3 + $0x1], 1 }
 0x249   :  { %875 = vsyncpa [#allocation5], 1 }
 0x24a   :  { %877 = vsyncpa [#allocation5 + $0x1], 1 }

</bundles_post_ra>
